<compile_context>
chip_gen: v7x
topology: tpu7x:2x2x1
jax: 0.10.0
libtpu: 0.0.40
codegen_flags: <defaults>
</compile_context>

<pallas_src>
import functools

import jax
import jax.numpy as jnp
from jax.experimental import pallas as pl
from jax.experimental.pallas import tpu as pltpu

EPS = 1e-5
GROUPS = 32                      # nn.GroupNorm(num_groups=32, ...)
VMEM_LIMIT = 48 * 1024 * 1024    # explicit scoped-VMEM limit (headroom on v7x)


# ----------------------------------------------------------------------------
# In-kernel helpers (traced inside the Pallas kernel bodies)
# ----------------------------------------------------------------------------
def _group_reduce(v, C):
    """v: (1, C).  Sum channels within each of the 32 groups, broadcast back."""
    cpg = C // GROUPS
    if cpg == 1:
        return v
    g = jnp.sum(v.reshape(GROUPS, cpg), axis=1, keepdims=True)
    return jnp.broadcast_to(g, (GROUPS, cpg)).reshape(1, C)


def _groupnorm_silu(xf, gamma, beta, C):
    """xf: (HW, C) f32.  Two-pass GroupNorm(32) (biased var) + SiLU."""
    cpg = C // GROUPS
    count = float(xf.shape[0] * cpg)
    mean = _group_reduce(jnp.sum(xf, axis=0, keepdims=True), C) / count
    d = xf - mean
    var = _group_reduce(jnp.sum(d * d, axis=0, keepdims=True), C) / count
    y = d * jax.lax.rsqrt(var + EPS) * gamma + beta
    return y * jax.nn.sigmoid(y)                          # SiLU


def _conv3x3_im2col(pad_ref, w_bf16, H, W, C):
    """pad_ref: (H+2, W+2, C) f32 VMEM scratch, zero border, interior = act.
    w_bf16: (9*C, C) bf16 with rows ordered (tap = ky*3+kx, cin).
    Returns (H*W, C) f32 — a single K=9C MXU matmul."""
    yp = pad_ref[...].astype(jnp.bfloat16)                # (H+2, W+2, C)
    cols = [yp[dy:dy + H, dx:dx + W, :].reshape(H * W, C)
            for dy in range(3) for dx in range(3)]
    patches = jnp.concatenate(cols, axis=-1)              # (H*W, 9C) bf16
    return jnp.dot(patches, w_bf16, preferred_element_type=jnp.float32)


# ----------------------------------------------------------------------------
# Kernels
# ----------------------------------------------------------------------------
def _resnet_block_kernel(x_ref, g1_ref, b1_ref, w1_ref, c1b_ref,
                         g2_ref, b2_ref, w2_ref, c2b_ref,
                         wr_ref, rb_ref, out_ref, pad_ref, *, H, W, C):
    x = x_ref[0].astype(jnp.float32)                      # (H, W, C)
    x_flat = x.reshape(H * W, C)

    # Zero the padded scratch once per grid step; only the interior is
    # rewritten below, so the border stays zero for both 3x3 convs.
    pad_ref[...] = jnp.zeros_like(pad_ref)

    # ---- GroupNorm1 + SiLU + conv1 (3x3, zero padding) ----
    y1 = _groupnorm_silu(x_flat, g1_ref[...], b1_ref[...], C)
    pad_ref[1:H + 1, 1:W + 1, :] = y1.reshape(H, W, C)
    h = _conv3x3_im2col(pad_ref, w1_ref[...], H, W, C) + c1b_ref[...]

    # ---- GroupNorm2 + SiLU + conv2 (3x3, zero padding) ----
    y2 = _groupnorm_silu(h, g2_ref[...], b2_ref[...], C)
    pad_ref[1:H + 1, 1:W + 1, :] = y2.reshape(H, W, C)
    h2 = _conv3x3_im2col(pad_ref, w2_ref[...], H, W, C) + c2b_ref[...]

    # ---- 1x1 residual conv + add ----
    res = jnp.dot(x_flat.astype(jnp.bfloat16), wr_ref[...],
                  preferred_element_type=jnp.float32) + rb_ref[...]
    out_ref[0] = (h2 + res).reshape(H, W, C)


def _upsample_kernel(x_ref, w_ref, b_ref, out_ref, *, W, C, F):
    # ConvTranspose2d(kernel=stride=F): one input row -> F shuffled out rows.
    x = x_ref[0, 0].astype(jnp.bfloat16)                  # (W, C)
    b = b_ref[...]                                        # (1, F*C) f32
    for i in range(F):
        y = jnp.dot(x, w_ref[i], preferred_element_type=jnp.float32) + b
        out_ref[0, i] = y                                 # (W, F*C)


# ----------------------------------------------------------------------------
# pallas_call wrappers
# ----------------------------------------------------------------------------
def _resnet_block(x, g1, b1, w1, c1b, g2, b2, w2, c2b, wr, rb):
    N, H, W, C = x.shape
    kernel = functools.partial(_resnet_block_kernel, H=H, W=W, C=C)
    whole = lambda n: (0, 0)
    return pl.pallas_call(
        kernel,
        out_shape=jax.ShapeDtypeStruct((N, H, W, C), jnp.float32),
        grid=(N,),
        in_specs=[
            pl.BlockSpec((1, H, W, C), lambda n: (n, 0, 0, 0)),   # x
            pl.BlockSpec((1, C), whole),                          # g1
            pl.BlockSpec((1, C), whole),                          # b1
            pl.BlockSpec((9 * C, C), whole),                      # w1 (bf16)
            pl.BlockSpec((1, C), whole),                          # c1b
            pl.BlockSpec((1, C), whole),                          # g2
            pl.BlockSpec((1, C), whole),                          # b2
            pl.BlockSpec((9 * C, C), whole),                      # w2 (bf16)
            pl.BlockSpec((1, C), whole),                          # c2b
            pl.BlockSpec((C, C), whole),                          # wr (bf16)
            pl.BlockSpec((1, C), whole),                          # rb
        ],
        out_specs=pl.BlockSpec((1, H, W, C), lambda n: (n, 0, 0, 0)),
        scratch_shapes=[pltpu.VMEM((H + 2, W + 2, C), jnp.float32)],
        compiler_params=pltpu.CompilerParams(
            dimension_semantics=("parallel",),
            vmem_limit_bytes=VMEM_LIMIT),
    )(x, g1, b1, w1, c1b, g2, b2, w2, c2b, wr, rb)


def _upsample(x, up_w, up_b, factor):
    N, H, W, C = x.shape
    F = factor
    # up_w: (Cin, i, j, Cout) -> (i, Cin, j*C+Cout), bf16.
    w_r = jnp.transpose(up_w, (1, 0, 2, 3)).reshape(F, C, F * C)
    w_r = w_r.astype(jnp.bfloat16)
    # Bias tiled to the (j, co) flattened order used by w_r.
    b_r = jnp.tile(up_b, (1, F))                          # (1, F*C)
    kernel = functools.partial(_upsample_kernel, W=W, C=C, F=F)
    out = pl.pallas_call(
        kernel,
        out_shape=jax.ShapeDtypeStruct((N, H * F, W, F * C), jnp.float32),
        grid=(N, H),
        in_specs=[
            pl.BlockSpec((1, 1, W, C), lambda n, h: (n, h, 0, 0)),
            pl.BlockSpec((F, C, F * C), lambda n, h: (0, 0, 0)),
            pl.BlockSpec((1, F * C), lambda n, h: (0, 0)),
        ],
        out_specs=pl.BlockSpec((1, F, W, F * C), lambda n, h: (n, h, 0, 0)),
        compiler_params=pltpu.CompilerParams(
            dimension_semantics=("parallel", "parallel"),
            vmem_limit_bytes=VMEM_LIMIT),
    )(x, w_r, b_r)
    # Free reshape: (N, H*F, W, F*C) and (N, H*F, W*F, C) share the same
    # row-major memory layout (pixel shuffle was done by the store pattern).
    return out.reshape(N, H * F, W * F, C)


# ----------------------------------------------------------------------------
# Parameters + forward
# ----------------------------------------------------------------------------
def init_params(key, C, layers_per_block, factor):
    params = {"layers": []}
    for _ in range(layers_per_block):
        key, *ks = jax.random.split(key, 11)
        params["layers"].append({
            "g1": 1.0 + 0.1 * jax.random.normal(ks[0], (1, C), jnp.float32),
            "b1": 0.1 * jax.random.normal(ks[1], (1, C), jnp.float32),
            "w1": 0.1 * jax.random.normal(ks[2], (9, C, C), jnp.float32),
            "c1b": 0.1 * jax.random.normal(ks[3], (1, C), jnp.float32),
            "g2": 1.0 + 0.1 * jax.random.normal(ks[4], (1, C), jnp.float32),
            "b2": 0.1 * jax.random.normal(ks[5], (1, C), jnp.float32),
            "w2": 0.1 * jax.random.normal(ks[6], (9, C, C), jnp.float32),
            "c2b": 0.1 * jax.random.normal(ks[7], (1, C), jnp.float32),
            "wr": 0.1 * jax.random.normal(ks[8], (C, C), jnp.float32),
            "rb": 0.1 * jax.random.normal(ks[9], (1, C), jnp.float32),
        })
    if factor > 1:
        key, k1, k2 = jax.random.split(key, 3)
        # ConvTranspose2d weight stored as (Cin, i, j, Cout)
        params["up_w"] = 0.1 * jax.random.normal(
            k1, (C, factor, factor, C), jnp.float32)
        params["up_b"] = 0.1 * jax.random.normal(k2, (1, C), jnp.float32)
    return params


def up_block_forward(x_nchw, params, factor):
    x = jnp.transpose(x_nchw, (0, 2, 3, 1))               # NCHW -> NHWC
    for lp in params["layers"]:
        C = x.shape[-1]
        w1 = lp["w1"].reshape(9 * C, C).astype(jnp.bfloat16)  # (tap,cin)->row
        w2 = lp["w2"].reshape(9 * C, C).astype(jnp.bfloat16)
        wr = lp["wr"].astype(jnp.bfloat16)
        x = _resnet_block(x, lp["g1"], lp["b1"], w1, lp["c1b"],
                          lp["g2"], lp["b2"], w2, lp["c2b"], wr, lp["rb"])
    if factor > 1:
        x = _upsample(x, params["up_w"], params["up_b"], factor)
    return jnp.transpose(x, (0, 3, 1, 2))                  # NHWC -> NCHW


# ----------------------------------------------------------------------------
# Pure-JAX reference (f32, for validation)
# ----------------------------------------------------------------------------
def _ref_groupnorm(x, gamma, beta):
    N, H, W, C = x.shape
    cpg = C // GROUPS
    xr = x.reshape(N, H, W, GROUPS, cpg)
    mean = xr.mean(axis=(1, 2, 4), keepdims=True)
    var = ((xr - mean) ** 2).mean(axis=(1, 2, 4), keepdims=True)
    xn = ((xr - mean) / jnp.sqrt(var + EPS)).reshape(N, H, W, C)
    return xn * gamma.reshape(1, 1, 1, C) + beta.reshape(1, 1, 1, C)


def _ref_conv3x3(x, w_taps, b):
    C = x.shape[-1]
    w = w_taps.reshape(3, 3, C, C)                         # HWIO
    y = jax.lax.conv_general_dilated(
        x, w, (1, 1), "SAME", dimension_numbers=("NHWC", "HWIO", "NHWC"))
    return y + b.reshape(1, 1, 1, C)


def ref_forward(x_nchw, params, factor):
    x = jnp.transpose(x_nchw, (0, 2, 3, 1))
    for lp in params["layers"]:
        res = x
        h = jax.nn.silu(_ref_groupnorm(x, lp["g1"], lp["b1"]))
        h = _ref_conv3x3(h, lp["w1"], lp["c1b"])
        h = jax.nn.silu(_ref_groupnorm(h, lp["g2"], lp["b2"]))
        h = _ref_conv3x3(h, lp["w2"], lp["c2b"])
        x = h + jnp.einsum("nhwc,cd->nhwd", res, lp["wr"]) \
              + lp["rb"].reshape(1, 1, 1, -1)
    if factor > 1:
        N, H, W, C = x.shape
        F = factor
        y = jnp.einsum("nhwc,cijo->nhiwjo", x, params["up_w"])
        x = y.reshape(N, H * F, W * F, C) + params["up_b"].reshape(1, 1, 1, C)
    return jnp.transpose(x, (0, 3, 1, 2))


# ----------------------------------------------------------------------------
if __name__ == "__main__":
    N, C, H, W = 2, 32, 8, 8          # channels must be divisible by 32 groups
    layers_per_block, factor = 2, 2

    key = jax.random.PRNGKey(0)
    kx, kp = jax.random.split(key)
    x = jax.random.normal(kx, (N, C, H, W), jnp.float32)
    params = init_params(kp, C, layers_per_block, factor)

    fwd = jax.jit(functools.partial(up_block_forward, factor=factor))
    out = jax.block_until_ready(fwd(x, params))

    assert out.shape == (N, C, H * factor, W * factor), out.shape
    ref = ref_forward(x, params, factor)
    err = float(jnp.max(jnp.abs(out - ref)))
    scale = float(jnp.max(jnp.abs(ref)))
    # bf16 MXU operands (f32 accumulation) => relative tolerance check.
    assert err <= 2e-2 * max(scale, 1.0), f"max abs err = {err}, scale = {scale}"
    print("KERNEL_OK")
</pallas_src>

<mosaic_0001>
module attributes {stable_mosaic.version = 11 : i64} {
  func.func @_upsample_kernel(%arg0: i32, %arg1: i32, %arg2: memref<1x1x8x32xf32, #tpu.memory_space<vmem>>, %arg3: memref<2x32x64xbf16, #tpu.memory_space<vmem>>, %arg4: memref<1x64xf32, #tpu.memory_space<vmem>>, %arg5: memref<1x2x8x64xf32, #tpu.memory_space<vmem>>) attributes {dimension_semantics = [#tpu.dimension_semantics<parallel>, #tpu.dimension_semantics<parallel>], iteration_bounds = array<i64: 2, 8>, scalar_prefetch = 0 : i64, scratch_operands = 0 : i64, tpu.core_type = #tpu.core_type<tc>, window_params = [{transform_indices = @transform_0, window_bounds = array<i64: 1, 1, 8, 32>}, {pipeline_mode = #tpu.pipeline_mode<synchronous>, transform_indices = @transform_1, window_bounds = array<i64: 2, 32, 64>}, {pipeline_mode = #tpu.pipeline_mode<synchronous>, transform_indices = @transform_2, window_bounds = array<i64: 1, 64>}, {transform_indices = @transform_3, window_bounds = array<i64: 1, 2, 8, 64>}]} {
    %c0 = arith.constant 0 : index
    %c0_0 = arith.constant 0 : index
    %c0_1 = arith.constant 0 : index
    %c0_2 = arith.constant 0 : index
    %0 = vector.load %arg2[%c0, %c0_0, %c0_1, %c0_2] : memref<1x1x8x32xf32, #tpu.memory_space<vmem>>, vector<1x1x8x32xf32>
    %1 = vector.shape_cast %0 : vector<1x1x8x32xf32> to vector<8x32xf32>
    %2 = arith.truncf %1 : vector<8x32xf32> to vector<8x32xbf16>
    %c0_3 = arith.constant 0 : index
    %c0_4 = arith.constant 0 : index
    %3 = vector.load %arg4[%c0_3, %c0_4] : memref<1x64xf32, #tpu.memory_space<vmem>>, vector<1x64xf32>
    %c0_5 = arith.constant 0 : index
    %c0_6 = arith.constant 0 : index
    %c0_7 = arith.constant 0 : index
    %4 = vector.load %arg3[%c0_5, %c0_6, %c0_7] : memref<2x32x64xbf16, #tpu.memory_space<vmem>>, vector<1x32x64xbf16>
    %5 = vector.shape_cast %4 : vector<1x32x64xbf16> to vector<32x64xbf16>
    %cst = arith.constant dense<0.000000e+00> : vector<8x64xf32>
    %6 = tpu.matmul %2, %5, %cst {dimension_numbers = #tpu.dot_dimension_numbers<[1], [0], [0], [1], [0, 0, 1, 1], [], []>} : vector<8x32xbf16>, vector<32x64xbf16>, vector<8x64xf32> -> vector<8x64xf32>
    %7 = vector.broadcast %3 : vector<1x64xf32> to vector<8x64xf32>
    %8 = arith.addf %6, %7 : vector<8x64xf32>
    %c0_8 = arith.constant 0 : index
    %c0_9 = arith.constant 0 : index
    %c0_10 = arith.constant 0 : index
    %c0_11 = arith.constant 0 : index
    %9 = vector.load %arg5[%c0_8, %c0_9, %c0_10, %c0_11] : memref<1x2x8x64xf32, #tpu.memory_space<vmem>>, vector<1x1x8x64xf32>
    %10 = vector.shape_cast %9 : vector<1x1x8x64xf32> to vector<8x64xf32>
    %11 = vector.shape_cast %8 : vector<8x64xf32> to vector<1x1x8x64xf32>
    tpu.vector_store %arg5[%c0_8, %c0_9, %c0_10, %c0_11], %11 {strides = array<i32>} : memref<1x2x8x64xf32, #tpu.memory_space<vmem>>, vector<1x1x8x64xf32>,
    %c1 = arith.constant 1 : index
    %c0_12 = arith.constant 0 : index
    %c0_13 = arith.constant 0 : index
    %12 = vector.load %arg3[%c1, %c0_12, %c0_13] : memref<2x32x64xbf16, #tpu.memory_space<vmem>>, vector<1x32x64xbf16>
    %13 = vector.shape_cast %12 : vector<1x32x64xbf16> to vector<32x64xbf16>
    %cst_14 = arith.constant dense<0.000000e+00> : vector<8x64xf32>
    %14 = tpu.matmul %2, %13, %cst_14 {dimension_numbers = #tpu.dot_dimension_numbers<[1], [0], [0], [1], [0, 0, 1, 1], [], []>} : vector<8x32xbf16>, vector<32x64xbf16>, vector<8x64xf32> -> vector<8x64xf32>
    %15 = vector.broadcast %3 : vector<1x64xf32> to vector<8x64xf32>
    %16 = arith.addf %14, %15 : vector<8x64xf32>
    %c0_15 = arith.constant 0 : index
    %c1_16 = arith.constant 1 : index
    %c0_17 = arith.constant 0 : index
    %c0_18 = arith.constant 0 : index
    %17 = vector.load %arg5[%c0_15, %c1_16, %c0_17, %c0_18] : memref<1x2x8x64xf32, #tpu.memory_space<vmem>>, vector<1x1x8x64xf32>
    %18 = vector.shape_cast %17 : vector<1x1x8x64xf32> to vector<8x64xf32>
    %19 = vector.shape_cast %16 : vector<8x64xf32> to vector<1x1x8x64xf32>
    tpu.vector_store %arg5[%c0_15, %c1_16, %c0_17, %c0_18], %19 {strides = array<i32>} : memref<1x2x8x64xf32, #tpu.memory_space<vmem>>, vector<1x1x8x64xf32>,
    return
  }
  func.func @transform_0(%arg0: i32, %arg1: i32) -> (i32, i32, i32, i32) {
    %c0_i32 = arith.constant 0 : i32
    %c0_i32_0 = arith.constant 0 : i32
    %c0_i32_1 = arith.constant 0 : i32
    return %arg0, %arg1, %c0_i32, %c0_i32_0 : i32, i32, i32, i32
  }
  func.func @transform_1(%arg0: i32, %arg1: i32) -> (i32, i32, i32) {
    %c0_i32 = arith.constant 0 : i32
    %c0_i32_0 = arith.constant 0 : i32
    %c0_i32_1 = arith.constant 0 : i32
    %c0_i32_2 = arith.constant 0 : i32
    return %c0_i32, %c0_i32_0, %c0_i32_1 : i32, i32, i32
  }
  func.func @transform_2(%arg0: i32, %arg1: i32) -> (i32, i32) {
    %c0_i32 = arith.constant 0 : i32
    %c0_i32_0 = arith.constant 0 : i32
    %c0_i32_1 = arith.constant 0 : i32
    return %c0_i32, %c0_i32_0 : i32, i32
  }
  func.func @transform_3(%arg0: i32, %arg1: i32) -> (i32, i32, i32, i32) {
    %c0_i32 = arith.constant 0 : i32
    %c0_i32_0 = arith.constant 0 : i32
    %c0_i32_1 = arith.constant 0 : i32
    return %arg0, %arg1, %c0_i32, %c0_i32_0 : i32, i32, i32, i32
  }
}

module attributes {stable_mosaic.version = 11 : i64} {
  func.func @_resnet_block_kernel(%arg0: i32, %arg1: memref<1x8x8x32xf32, #tpu.memory_space<vmem>>, %arg2: memref<1x32xf32, #tpu.memory_space<vmem>>, %arg3: memref<1x32xf32, #tpu.memory_space<vmem>>, %arg4: memref<288x32xbf16, #tpu.memory_space<vmem>>, %arg5: memref<1x32xf32, #tpu.memory_space<vmem>>, %arg6: memref<1x32xf32, #tpu.memory_space<vmem>>, %arg7: memref<1x32xf32, #tpu.memory_space<vmem>>, %arg8: memref<288x32xbf16, #tpu.memory_space<vmem>>, %arg9: memref<1x32xf32, #tpu.memory_space<vmem>>, %arg10: memref<32x32xbf16, #tpu.memory_space<vmem>>, %arg11: memref<1x32xf32, #tpu.memory_space<vmem>>, %arg12: memref<1x8x8x32xf32, #tpu.memory_space<vmem>>, %arg13: memref<10x10x32xf32, #tpu.memory_space<vmem>>) attributes {dimension_semantics = [#tpu.dimension_semantics<parallel>], iteration_bounds = array<i64: 2>, scalar_prefetch = 0 : i64, scratch_operands = 1 : i64, tpu.core_type = #tpu.core_type<tc>, window_params = [{transform_indices = @transform_0, window_bounds = array<i64: 1, 8, 8, 32>}, {pipeline_mode = #tpu.pipeline_mode<synchronous>, transform_indices = @transform_1, window_bounds = array<i64: 1, 32>}, {pipeline_mode = #tpu.pipeline_mode<synchronous>, transform_indices = @transform_2, window_bounds = array<i64: 1, 32>}, {pipeline_mode = #tpu.pipeline_mode<synchronous>, transform_indices = @transform_3, window_bounds = array<i64: 288, 32>}, {pipeline_mode = #tpu.pipeline_mode<synchronous>, transform_indices = @transform_4, window_bounds = array<i64: 1, 32>}, {pipeline_mode = #tpu.pipeline_mode<synchronous>, transform_indices = @transform_5, window_bounds = array<i64: 1, 32>}, {pipeline_mode = #tpu.pipeline_mode<synchronous>, transform_indices = @transform_6, window_bounds = array<i64: 1, 32>}, {pipeline_mode = #tpu.pipeline_mode<synchronous>, transform_indices = @transform_7, window_bounds = array<i64: 288, 32>}, {pipeline_mode = #tpu.pipeline_mode<synchronous>, transform_indices = @transform_8, window_bounds = array<i64: 1, 32>}, {pipeline_mode = #tpu.pipeline_mode<synchronous>, transform_indices = @transform_9, window_bounds = array<i64: 32, 32>}, {pipeline_mode = #tpu.pipeline_mode<synchronous>, transform_indices = @transform_10, window_bounds = array<i64: 1, 32>}, {transform_indices = @transform_11, window_bounds = array<i64: 1, 8, 8, 32>}]} {
    %c0 = arith.constant 0 : index
    %c0_0 = arith.constant 0 : index
    %c0_1 = arith.constant 0 : index
    %c0_2 = arith.constant 0 : index
    %0 = vector.load %arg1[%c0, %c0_0, %c0_1, %c0_2] : memref<1x8x8x32xf32, #tpu.memory_space<vmem>>, vector<1x8x8x32xf32>
    %1 = vector.shape_cast %0 : vector<1x8x8x32xf32> to vector<8x8x32xf32>
    %2 = vector.shape_cast %1 : vector<8x8x32xf32> to vector<64x32xf32>
    %cst = arith.constant 0.000000e+00 : f32
    %3 = vector.broadcast %cst : f32 to vector<10x10x32xf32>
    %c0_3 = arith.constant 0 : index
    %c0_4 = arith.constant 0 : index
    %c0_5 = arith.constant 0 : index
    %4 = vector.load %arg13[%c0_3, %c0_4, %c0_5] : memref<10x10x32xf32, #tpu.memory_space<vmem>>, vector<10x10x32xf32>
    tpu.vector_store %arg13[%c0_3, %c0_4, %c0_5], %3 {strides = array<i32>} : memref<10x10x32xf32, #tpu.memory_space<vmem>>, vector<10x10x32xf32>,
    %c0_6 = arith.constant 0 : index
    %c0_7 = arith.constant 0 : index
    %5 = vector.load %arg2[%c0_6, %c0_7] : memref<1x32xf32, #tpu.memory_space<vmem>>, vector<1x32xf32>
    %c0_8 = arith.constant 0 : index
    %c0_9 = arith.constant 0 : index
    %6 = vector.load %arg3[%c0_8, %c0_9] : memref<1x32xf32, #tpu.memory_space<vmem>>, vector<1x32xf32>
    %cst_10 = arith.constant dense<0.000000e+00> : vector<32xf32>
    %7 = vector.multi_reduction <add>, %2, %cst_10 [0] : vector<64x32xf32> to vector<32xf32>
    %8 = vector.shape_cast %7 : vector<32xf32> to vector<1x32xf32>
    %cst_11 = arith.constant 6.400000e+01 : f32
    %9 = vector.broadcast %cst_11 : f32 to vector<1x32xf32>
    %10 = arith.divf %8, %9 : vector<1x32xf32>
    %11 = vector.broadcast %10 : vector<1x32xf32> to vector<64x32xf32>
    %12 = arith.subf %2, %11 : vector<64x32xf32>
    %13 = arith.mulf %12, %12 : vector<64x32xf32>
    %cst_12 = arith.constant dense<0.000000e+00> : vector<32xf32>
    %14 = vector.multi_reduction <add>, %13, %cst_12 [0] : vector<64x32xf32> to vector<32xf32>
    %15 = vector.shape_cast %14 : vector<32xf32> to vector<1x32xf32>
    %cst_13 = arith.constant 6.400000e+01 : f32
    %16 = vector.broadcast %cst_13 : f32 to vector<1x32xf32>
    %17 = arith.divf %15, %16 : vector<1x32xf32>
    %cst_14 = arith.constant 9.99999974E-6 : f32
    %18 = vector.broadcast %cst_14 : f32 to vector<1x32xf32>
    %19 = arith.addf %17, %18 : vector<1x32xf32>
    %20 = math.rsqrt %19 : vector<1x32xf32>
    %21 = vector.broadcast %20 : vector<1x32xf32> to vector<64x32xf32>
    %22 = arith.mulf %12, %21 : vector<64x32xf32>
    %23 = vector.broadcast %5 : vector<1x32xf32> to vector<64x32xf32>
    %24 = arith.mulf %22, %23 : vector<64x32xf32>
    %25 = vector.broadcast %6 : vector<1x32xf32> to vector<64x32xf32>
    %26 = arith.addf %24, %25 : vector<64x32xf32>
    %27 = arith.negf %26 : vector<64x32xf32>
    %28 = math.exp %27 : vector<64x32xf32>
    %cst_15 = arith.constant 1.000000e+00 : f32
    %29 = vector.broadcast %cst_15 : f32 to vector<64x32xf32>
    %30 = arith.addf %29, %28 : vector<64x32xf32>
    %31 = arith.divf %29, %30 : vector<64x32xf32>
    %32 = arith.mulf %26, %31 : vector<64x32xf32>
    %33 = vector.shape_cast %32 : vector<64x32xf32> to vector<8x8x32xf32>
    %c1 = arith.constant 1 : index
    %c1_16 = arith.constant 1 : index
    %c0_17 = arith.constant 0 : index
    %34 = vector.load %arg13[%c1, %c1_16, %c0_17] : memref<10x10x32xf32, #tpu.memory_space<vmem>>, vector<8x8x32xf32>
    tpu.vector_store %arg13[%c1, %c1_16, %c0_17], %33 {strides = array<i32>} : memref<10x10x32xf32, #tpu.memory_space<vmem>>, vector<8x8x32xf32>,
    %c0_18 = arith.constant 0 : index
    %c0_19 = arith.constant 0 : index
    %35 = vector.load %arg4[%c0_18, %c0_19] : memref<288x32xbf16, #tpu.memory_space<vmem>>, vector<288x32xbf16>
    %c0_20 = arith.constant 0 : index
    %c0_21 = arith.constant 0 : index
    %c0_22 = arith.constant 0 : index
    %36 = vector.load %arg13[%c0_20, %c0_21, %c0_22] : memref<10x10x32xf32, #tpu.memory_space<vmem>>, vector<10x10x32xf32>
    %37 = arith.truncf %36 : vector<10x10x32xf32> to vector<10x10x32xbf16>
    %38 = vector.extract_strided_slice %37 {offsets = [0, 0, 0], sizes = [8, 8, 32], strides = [1, 1, 1]} : vector<10x10x32xbf16> to vector<8x8x32xbf16>
    %39 = vector.shape_cast %38 : vector<8x8x32xbf16> to vector<64x32xbf16>
    %40 = vector.extract_strided_slice %37 {offsets = [0, 1, 0], sizes = [8, 8, 32], strides = [1, 1, 1]} : vector<10x10x32xbf16> to vector<8x8x32xbf16>
    %41 = vector.shape_cast %40 : vector<8x8x32xbf16> to vector<64x32xbf16>
    %42 = vector.extract_strided_slice %37 {offsets = [0, 2, 0], sizes = [8, 8, 32], strides = [1, 1, 1]} : vector<10x10x32xbf16> to vector<8x8x32xbf16>
    %43 = vector.shape_cast %42 : vector<8x8x32xbf16> to vector<64x32xbf16>
    %44 = vector.extract_strided_slice %37 {offsets = [1, 0, 0], sizes = [8, 8, 32], strides = [1, 1, 1]} : vector<10x10x32xbf16> to vector<8x8x32xbf16>
    %45 = vector.shape_cast %44 : vector<8x8x32xbf16> to vector<64x32xbf16>
    %46 = vector.extract_strided_slice %37 {offsets = [1, 1, 0], sizes = [8, 8, 32], strides = [1, 1, 1]} : vector<10x10x32xbf16> to vector<8x8x32xbf16>
    %47 = vector.shape_cast %46 : vector<8x8x32xbf16> to vector<64x32xbf16>
    %48 = vector.extract_strided_slice %37 {offsets = [1, 2, 0], sizes = [8, 8, 32], strides = [1, 1, 1]} : vector<10x10x32xbf16> to vector<8x8x32xbf16>
    %49 = vector.shape_cast %48 : vector<8x8x32xbf16> to vector<64x32xbf16>
    %50 = vector.extract_strided_slice %37 {offsets = [2, 0, 0], sizes = [8, 8, 32], strides = [1, 1, 1]} : vector<10x10x32xbf16> to vector<8x8x32xbf16>
    %51 = vector.shape_cast %50 : vector<8x8x32xbf16> to vector<64x32xbf16>
    %52 = vector.extract_strided_slice %37 {offsets = [2, 1, 0], sizes = [8, 8, 32], strides = [1, 1, 1]} : vector<10x10x32xbf16> to vector<8x8x32xbf16>
    %53 = vector.shape_cast %52 : vector<8x8x32xbf16> to vector<64x32xbf16>
    %54 = vector.extract_strided_slice %37 {offsets = [2, 2, 0], sizes = [8, 8, 32], strides = [1, 1, 1]} : vector<10x10x32xbf16> to vector<8x8x32xbf16>
    %55 = vector.shape_cast %54 : vector<8x8x32xbf16> to vector<64x32xbf16>
    %56 = tpu.concatenate %39, %41, %43, %45, %47, %49, %51, %53, %55 in 1 : vector<64x32xbf16>, vector<64x32xbf16>, vector<64x32xbf16>, vector<64x32xbf16>, vector<64x32xbf16>, vector<64x32xbf16>, vector<64x32xbf16>, vector<64x32xbf16>, vector<64x32xbf16> -> vector<64x288xbf16>
    %cst_23 = arith.constant dense<0.000000e+00> : vector<64x32xf32>
    %57 = tpu.matmul %56, %35, %cst_23 {dimension_numbers = #tpu.dot_dimension_numbers<[1], [0], [0], [1], [0, 0, 1, 1], [], []>} : vector<64x288xbf16>, vector<288x32xbf16>, vector<64x32xf32> -> vector<64x32xf32>
    %c0_24 = arith.constant 0 : index
    %c0_25 = arith.constant 0 : index
    %58 = vector.load %arg5[%c0_24, %c0_25] : memref<1x32xf32, #tpu.memory_space<vmem>>, vector<1x32xf32>
    %59 = vector.broadcast %58 : vector<1x32xf32> to vector<64x32xf32>
    %60 = arith.addf %57, %59 : vector<64x32xf32>
    %c0_26 = arith.constant 0 : index
    %c0_27 = arith.constant 0 : index
    %61 = vector.load %arg6[%c0_26, %c0_27] : memref<1x32xf32, #tpu.memory_space<vmem>>, vector<1x32xf32>
    %c0_28 = arith.constant 0 : index
    %c0_29 = arith.constant 0 : index
    %62 = vector.load %arg7[%c0_28, %c0_29] : memref<1x32xf32, #tpu.memory_space<vmem>>, vector<1x32xf32>
    %cst_30 = arith.constant dense<0.000000e+00> : vector<32xf32>
    %63 = vector.multi_reduction <add>, %60, %cst_30 [0] : vector<64x32xf32> to vector<32xf32>
    %64 = vector.shape_cast %63 : vector<32xf32> to vector<1x32xf32>
    %cst_31 = arith.constant 6.400000e+01 : f32
    %65 = vector.broadcast %cst_31 : f32 to vector<1x32xf32>
    %66 = arith.divf %64, %65 : vector<1x32xf32>
    %67 = vector.broadcast %66 : vector<1x32xf32> to vector<64x32xf32>
    %68 = arith.subf %60, %67 : vector<64x32xf32>
    %69 = arith.mulf %68, %68 : vector<64x32xf32>
    %cst_32 = arith.constant dense<0.000000e+00> : vector<32xf32>
    %70 = vector.multi_reduction <add>, %69, %cst_32 [0] : vector<64x32xf32> to vector<32xf32>
    %71 = vector.shape_cast %70 : vector<32xf32> to vector<1x32xf32>
    %cst_33 = arith.constant 6.400000e+01 : f32
    %72 = vector.broadcast %cst_33 : f32 to vector<1x32xf32>
    %73 = arith.divf %71, %72 : vector<1x32xf32>
    %cst_34 = arith.constant 9.99999974E-6 : f32
    %74 = vector.broadcast %cst_34 : f32 to vector<1x32xf32>
    %75 = arith.addf %73, %74 : vector<1x32xf32>
    %76 = math.rsqrt %75 : vector<1x32xf32>
    %77 = vector.broadcast %76 : vector<1x32xf32> to vector<64x32xf32>
    %78 = arith.mulf %68, %77 : vector<64x32xf32>
    %79 = vector.broadcast %61 : vector<1x32xf32> to vector<64x32xf32>
    %80 = arith.mulf %78, %79 : vector<64x32xf32>
    %81 = vector.broadcast %62 : vector<1x32xf32> to vector<64x32xf32>
    %82 = arith.addf %80, %81 : vector<64x32xf32>
    %83 = arith.negf %82 : vector<64x32xf32>
    %84 = math.exp %83 : vector<64x32xf32>
    %cst_35 = arith.constant 1.000000e+00 : f32
    %85 = vector.broadcast %cst_35 : f32 to vector<64x32xf32>
    %86 = arith.addf %85, %84 : vector<64x32xf32>
    %87 = arith.divf %85, %86 : vector<64x32xf32>
    %88 = arith.mulf %82, %87 : vector<64x32xf32>
    %89 = vector.shape_cast %88 : vector<64x32xf32> to vector<8x8x32xf32>
    %c1_36 = arith.constant 1 : index
    %c1_37 = arith.constant 1 : index
    %c0_38 = arith.constant 0 : index
    %90 = vector.load %arg13[%c1_36, %c1_37, %c0_38] : memref<10x10x32xf32, #tpu.memory_space<vmem>>, vector<8x8x32xf32>
    tpu.vector_store %arg13[%c1_36, %c1_37, %c0_38], %89 {strides = array<i32>} : memref<10x10x32xf32, #tpu.memory_space<vmem>>, vector<8x8x32xf32>,
    %c0_39 = arith.constant 0 : index
    %c0_40 = arith.constant 0 : index
    %91 = vector.load %arg8[%c0_39, %c0_40] : memref<288x32xbf16, #tpu.memory_space<vmem>>, vector<288x32xbf16>
    %c0_41 = arith.constant 0 : index
    %c0_42 = arith.constant 0 : index
    %c0_43 = arith.constant 0 : index
    %92 = vector.load %arg13[%c0_41, %c0_42, %c0_43] : memref<10x10x32xf32, #tpu.memory_space<vmem>>, vector<10x10x32xf32>
    %93 = arith.truncf %92 : vector<10x10x32xf32> to vector<10x10x32xbf16>
    %94 = vector.extract_strided_slice %93 {offsets = [0, 0, 0], sizes = [8, 8, 32], strides = [1, 1, 1]} : vector<10x10x32xbf16> to vector<8x8x32xbf16>
    %95 = vector.shape_cast %94 : vector<8x8x32xbf16> to vector<64x32xbf16>
    %96 = vector.extract_strided_slice %93 {offsets = [0, 1, 0], sizes = [8, 8, 32], strides = [1, 1, 1]} : vector<10x10x32xbf16> to vector<8x8x32xbf16>
    %97 = vector.shape_cast %96 : vector<8x8x32xbf16> to vector<64x32xbf16>
    %98 = vector.extract_strided_slice %93 {offsets = [0, 2, 0], sizes = [8, 8, 32], strides = [1, 1, 1]} : vector<10x10x32xbf16> to vector<8x8x32xbf16>
    %99 = vector.shape_cast %98 : vector<8x8x32xbf16> to vector<64x32xbf16>
    %100 = vector.extract_strided_slice %93 {offsets = [1, 0, 0], sizes = [8, 8, 32], strides = [1, 1, 1]} : vector<10x10x32xbf16> to vector<8x8x32xbf16>
    %101 = vector.shape_cast %100 : vector<8x8x32xbf16> to vector<64x32xbf16>
    %102 = vector.extract_strided_slice %93 {offsets = [1, 1, 0], sizes = [8, 8, 32], strides = [1, 1, 1]} : vector<10x10x32xbf16> to vector<8x8x32xbf16>
    %103 = vector.shape_cast %102 : vector<8x8x32xbf16> to vector<64x32xbf16>
    %104 = vector.extract_strided_slice %93 {offsets = [1, 2, 0], sizes = [8, 8, 32], strides = [1, 1, 1]} : vector<10x10x32xbf16> to vector<8x8x32xbf16>
    %105 = vector.shape_cast %104 : vector<8x8x32xbf16> to vector<64x32xbf16>
    %106 = vector.extract_strided_slice %93 {offsets = [2, 0, 0], sizes = [8, 8, 32], strides = [1, 1, 1]} : vector<10x10x32xbf16> to vector<8x8x32xbf16>
    %107 = vector.shape_cast %106 : vector<8x8x32xbf16> to vector<64x32xbf16>
    %108 = vector.extract_strided_slice %93 {offsets = [2, 1, 0], sizes = [8, 8, 32], strides = [1, 1, 1]} : vector<10x10x32xbf16> to vector<8x8x32xbf16>
    %109 = vector.shape_cast %108 : vector<8x8x32xbf16> to vector<64x32xbf16>
    %110 = vector.extract_strided_slice %93 {offsets = [2, 2, 0], sizes = [8, 8, 32], strides = [1, 1, 1]} : vector<10x10x32xbf16> to vector<8x8x32xbf16>
    %111 = vector.shape_cast %110 : vector<8x8x32xbf16> to vector<64x32xbf16>
    %112 = tpu.concatenate %95, %97, %99, %101, %103, %105, %107, %109, %111 in 1 : vector<64x32xbf16>, vector<64x32xbf16>, vector<64x32xbf16>, vector<64x32xbf16>, vector<64x32xbf16>, vector<64x32xbf16>, vector<64x32xbf16>, vector<64x32xbf16>, vector<64x32xbf16> -> vector<64x288xbf16>
    %cst_44 = arith.constant dense<0.000000e+00> : vector<64x32xf32>
    %113 = tpu.matmul %112, %91, %cst_44 {dimension_numbers = #tpu.dot_dimension_numbers<[1], [0], [0], [1], [0, 0, 1, 1], [], []>} : vector<64x288xbf16>, vector<288x32xbf16>, vector<64x32xf32> -> vector<64x32xf32>
    %c0_45 = arith.constant 0 : index
    %c0_46 = arith.constant 0 : index
    %114 = vector.load %arg9[%c0_45, %c0_46] : memref<1x32xf32, #tpu.memory_space<vmem>>, vector<1x32xf32>
    %115 = vector.broadcast %114 : vector<1x32xf32> to vector<64x32xf32>
    %116 = arith.addf %113, %115 : vector<64x32xf32>
    %117 = arith.truncf %2 : vector<64x32xf32> to vector<64x32xbf16>
    %c0_47 = arith.constant 0 : index
    %c0_48 = arith.constant 0 : index
    %118 = vector.load %arg10[%c0_47, %c0_48] : memref<32x32xbf16, #tpu.memory_space<vmem>>, vector<32x32xbf16>
    %cst_49 = arith.constant dense<0.000000e+00> : vector<64x32xf32>
    %119 = tpu.matmul %117, %118, %cst_49 {dimension_numbers = #tpu.dot_dimension_numbers<[1], [0], [0], [1], [0, 0, 1, 1], [], []>} : vector<64x32xbf16>, vector<32x32xbf16>, vector<64x32xf32> -> vector<64x32xf32>
    %c0_50 = arith.constant 0 : index
    %c0_51 = arith.constant 0 : index
    %120 = vector.load %arg11[%c0_50, %c0_51] : memref<1x32xf32, #tpu.memory_space<vmem>>, vector<1x32xf32>
    %121 = vector.broadcast %120 : vector<1x32xf32> to vector<64x32xf32>
    %122 = arith.addf %119, %121 : vector<64x32xf32>
    %123 = arith.addf %116, %122 : vector<64x32xf32>
    %124 = vector.shape_cast %123 : vector<64x32xf32> to vector<8x8x32xf32>
    %c0_52 = arith.constant 0 : index
    %c0_53 = arith.constant 0 : index
    %c0_54 = arith.constant 0 : index
    %c0_55 = arith.constant 0 : index
    %125 = vector.load %arg12[%c0_52, %c0_53, %c0_54, %c0_55] : memref<1x8x8x32xf32, #tpu.memory_space<vmem>>, vector<1x8x8x32xf32>
    %126 = vector.shape_cast %125 : vector<1x8x8x32xf32> to vector<8x8x32xf32>
    %127 = vector.shape_cast %124 : vector<8x8x32xf32> to vector<1x8x8x32xf32>
    tpu.vector_store %arg12[%c0_52, %c0_53, %c0_54, %c0_55], %127 {strides = array<i32>} : memref<1x8x8x32xf32, #tpu.memory_space<vmem>>, vector<1x8x8x32xf32>,
    return
  }
  func.func @transform_0(%arg0: i32) -> (i32, i32, i32, i32) {
    %c0_i32 = arith.constant 0 : i32
    %c0_i32_0 = arith.constant 0 : i32
    %c0_i32_1 = arith.constant 0 : i32
    %c0_i32_2 = arith.constant 0 : i32
    return %arg0, %c0_i32, %c0_i32_0, %c0_i32_1 : i32, i32, i32, i32
  }
  func.func @transform_1(%arg0: i32) -> (i32, i32) {
    %c0_i32 = arith.constant 0 : i32
    %c0_i32_0 = arith.constant 0 : i32
    %c0_i32_1 = arith.constant 0 : i32
    return %c0_i32, %c0_i32_0 : i32, i32
  }
  func.func @transform_2(%arg0: i32) -> (i32, i32) {
    %c0_i32 = arith.constant 0 : i32
    %c0_i32_0 = arith.constant 0 : i32
    %c0_i32_1 = arith.constant 0 : i32
    return %c0_i32, %c0_i32_0 : i32, i32
  }
  func.func @transform_3(%arg0: i32) -> (i32, i32) {
    %c0_i32 = arith.constant 0 : i32
    %c0_i32_0 = arith.constant 0 : i32
    %c0_i32_1 = arith.constant 0 : i32
    return %c0_i32, %c0_i32_0 : i32, i32
  }
  func.func @transform_4(%arg0: i32) -> (i32, i32) {
    %c0_i32 = arith.constant 0 : i32
    %c0_i32_0 = arith.constant 0 : i32
    %c0_i32_1 = arith.constant 0 : i32
    return %c0_i32, %c0_i32_0 : i32, i32
  }
  func.func @transform_5(%arg0: i32) -> (i32, i32) {
    %c0_i32 = arith.constant 0 : i32
    %c0_i32_0 = arith.constant 0 : i32
    %c0_i32_1 = arith.constant 0 : i32
    return %c0_i32, %c0_i32_0 : i32, i32
  }
  func.func @transform_6(%arg0: i32) -> (i32, i32) {
    %c0_i32 = arith.constant 0 : i32
    %c0_i32_0 = arith.constant 0 : i32
    %c0_i32_1 = arith.constant 0 : i32
    return %c0_i32, %c0_i32_0 : i32, i32
  }
  func.func @transform_7(%arg0: i32) -> (i32, i32) {
    %c0_i32 = arith.constant 0 : i32
    %c0_i32_0 = arith.constant 0 : i32
    %c0_i32_1 = arith.constant 0 : i32
    return %c0_i32, %c0_i32_0 : i32, i32
  }
  func.func @transform_8(%arg0: i32) -> (i32, i32) {
    %c0_i32 = arith.constant 0 : i32
    %c0_i32_0 = arith.constant 0 : i32
    %c0_i32_1 = arith.constant 0 : i32
    return %c0_i32, %c0_i32_0 : i32, i32
  }
  func.func @transform_9(%arg0: i32) -> (i32, i32) {
    %c0_i32 = arith.constant 0 : i32
    %c0_i32_0 = arith.constant 0 : i32
    %c0_i32_1 = arith.constant 0 : i32
    return %c0_i32, %c0_i32_0 : i32, i32
  }
  func.func @transform_10(%arg0: i32) -> (i32, i32) {
    %c0_i32 = arith.constant 0 : i32
    %c0_i32_0 = arith.constant 0 : i32
    %c0_i32_1 = arith.constant 0 : i32
    return %c0_i32, %c0_i32_0 : i32, i32
  }
  func.func @transform_11(%arg0: i32) -> (i32, i32, i32, i32) {
    %c0_i32 = arith.constant 0 : i32
    %c0_i32_0 = arith.constant 0 : i32
    %c0_i32_1 = arith.constant 0 : i32
    %c0_i32_2 = arith.constant 0 : i32
    return %arg0, %c0_i32, %c0_i32_0, %c0_i32_1 : i32, i32, i32, i32
  }
}

</mosaic_0001>

<bundles_post_ra>
// kernel: up_block_forward.5
= control target key start
LH: loop header
LB: loop body
LE: loop exit
PB: predicated region body
PF: predicated region fallthrough
CT: control target
= control target key end

     0   :  { %s580_s12 = smov 0   ;;  %s582_s13 = smov 0   ;;  %s655_s0 = inlined_call_operand.vmem [shape: f32[2,8,8,32], index: 0, kind: input, shape index: {}]   ;;  %s656_s1 = inlined_call_operand.vmem [shape: bf16[2,32,64], index: 1, kind: input, shape index: {}]   ;;  %s657_s2 = inlined_call_operand.vmem [shape: f32[1,64], index: 2, kind: input, shape index: {}]   ;;  %s658_s3 = inlined_call_operand.vmem [shape: f32[2,16,8,64], index: 3, kind: output, shape index: {}]  }
   0x1   :  { %s584_s14 = smov 0   ;;  %s586_s15 = smov 0  }
   0x2   :  { %s588_s16 = smov 0  }
   0x3 LB: > { %s22_s17 = sadd.s32 1, %s548_s14  ;;  %s25_s18 = sadd.s32 1, %s552_s15  ;;  %s556_s16 = sphi %s588_s16, %s13_s16   ;;  %s552_s15 = sphi %s586_s15, %s662_s15   ;;  %s548_s14 = sphi %s584_s14, %s661_s14   ;;  %s544_s13 = sphi %s582_s13, %s660_s13   ;;  %s540_s12 = sphi %s580_s12, %s659_s12  }
   0x4   : > { %p23_p0 = scmp.ge.s32.totalorder %s22_s17, 8  ;;  %p430_p1 = scmp.ge.s32.totalorder %s556_s16, 1 }
   0x5   : > { %p156_p2 = scmp.lt.s32.totalorder %s556_s16, 17 }
   0x6   : > { %s664_s17 = smov (%p23_p0, %s22_s17), 0  ;;  %s666_s18 = smov (!%p23_p0, %s25_s18), %s552_s15 }
   0x7   : > { %p157_p3 = pnand %p430_p1, %p156_p2  ;;  %p27_p4 = scmp.ge.s32.totalorder %s666_s18, 2 }
   0x8   : > { %v514_v0 = vld [vmem:[%s656_s1] sm:$0xff] (!%p157_p3)   ;;  %v558_v1 = vmov (!%p157_p3), 0.0   ;;  %v515_v2 = vld [vmem:[%s656_s1 + $0x10] sm:$0xff] (!%p157_p3)   ;;  %v516_v3 = vld [vmem:[%s656_s1 + $0x8] sm:$0xff] (!%p157_p3)   ;;  %vm559_vm0 = vmmov (!%p157_p3), 0   ;;  %p187_p5 = scmp.lt.s32.totalorder (!%p157_p3), %s544_s13, 1 }
   0x9   : > { %s668_s18 = smov (%p27_p4, %s666_s18), 0  ;;  %160 = sbr.rel (%p157_p3) target bundleno = 240 (0xf0), region = 32 }
   0xa   : > { %456 = vmatprep.subr.bf16.mxu0 (!%p157_p3), %v558_v1  ;;  %464 = vmatprep.subr.bf16.mxu1 (!%p157_p3), %v558_v1  ;;  %v517_v4 = vld [vmem:[%s656_s1 + $0x18] sm:$0xff] (!%p157_p3)   ;;  %p189_p6 = scmp.lt.s32.totalorder (!%p157_p3), %s540_s12, 7  ;;  %vm231_vm1 = vcmask (!%p157_p3), 261120   ;;  %s433_s7 = sshll.u32 (!%p157_p3), %s540_s12, 1  ;;  %v436_v7 = vld [vmem:[%s657_s2] ss:$0 sm:$0xff] (!%p157_p3) }
   0xb   : > { %457 = vmatpush3.bf16.msra.mxu0 (!%p157_p3), %v514_v0  ;;  %460 = vmatprep.mubr.msk.bf16.mxu0 (!%p157_p3), %vm559_vm0, %v558_v1  ;;  %p198_p7 = scmp.lt.s32.totalorder (!%p157_p3), %s433_s7, 15  ;;  %vm275_vm2 = vcmask (!%p157_p3), 523264  }
   0xc   : > { %465 = vmatpush3.bf16.msra.mxu1 (!%p157_p3), %v515_v2  ;;  %458 = vmatprep.subr.bf16.mxu0 (!%p157_p3), %v558_v1 }
   0xd   : > { %466 = vmatprep.subr.bf16.mxu1 (!%p157_p3), %v558_v1  ;;  %468 = vmatprep.mubr.msk.bf16.mxu1 (!%p157_p3), %vm559_vm0, %v558_v1 }
   0xf   : > { %459 = vmatpush3.bf16.msra.mxu0 (!%p157_p3), %v516_v3 }
  0x10   : > { %s670_s13 = smov (!%p187_p5, %s544_s13), 1  ;;  %467 = vmatpush3.bf16.msra.mxu1 %v517_v4  ;;  %s672_s7 = smov (!%p198_p7, %s433_s7), 15 }
  0x11   : > { %s190_s27 = scalar_select %p189_p6, %s540_s12, 7 }
  0x12   : > { %s431_s28 = sshll.u32 %s670_s13, 3  ;;  %s434_s8 = sshll.u32 %s670_s13, 4 }
  0x13   : > { %s192_s29 = sadd.s32 %s431_s28, %s190_s27  ;;  %s201_s9 = sadd.s32 %s434_s8, %s672_s7 }
  0x14   : > { %s432_s30 = sshll.u32 %s192_s29, 3  ;;  %s435_s10 = sshll.u32 %s201_s9, 3 }
  0x15   : > { %s194_s6 = scalar_lea.vmem %s655_s0, %s432_s30  ;;  %s203_s22 = scalar_lea.vmem %s658_s3, %s435_s10 }
  0x16   : > { %v206_v5 = vld [vmem:[%s194_s6] sm:$0xff] }
  0x17   : > { %v207_v6 = vpack.c.bf16 %v206_v5, %v206_v5 }
  0x19   : > { %461 = vmatmul.mubr.msk.bf16.vlgmr.msra.gmra.mrb[0].mxu0 %vm231_vm1, %v207_v6  ;;  %469 = vmatmul.mubr.msk.bf16.vlgmr.msra.gmra.mrb[0].mxu1 %vm231_vm1, %v207_v6 }
  0xec   : > { %v269_v8 = vpop.f32.mrb[0].mxu0  ;;  %v328_v9 = vpop.f32.mrb[0].mxu1 }
  0xed   : > { %v270_v10 = vadd.f32 %v436_v7, %v269_v8  ;;  %v329_v11 = vadd.f32 %v436_v7, %v328_v9  ;;  %v462_v12 = vpop.f32.mrb[1].mxu0  ;;  %v470_v13 = vpop.f32.mrb[1].mxu1 }
  0xee   : > { %v272_v14 = vpop.f32.mrb[2].mxu0  ;;  %v331_v15 = vpop.f32.mrb[2].mxu1 }
  0xef   : > { %276 = vst.msk [vmem:[%s203_s22] sm:$0xff] %vm275_vm2, %v270_v10  ;;  %447 = vst.msk [vmem:[%s203_s22 + $0x8] sm:$0xff] %vm275_vm2, %v329_v11  ;;  %v463_v16 = vpop.f32.mrb[3].mxu0  ;;  %v471_v17 = vpop.f32.mrb[3].mxu1 }
  0xf0 PF: > { %s13_s16 = sadd.s32 1, %s556_s16   ;;  %s659_s12 = smov %s548_s14 }
  0xf1   : > { %p10_p8 = scmp.ge.s32.totalorder %s13_s16, 18   ;;  %s660_s13 = smov %s552_s15 }
  0xf2   : > { %s661_s14 = smov %s664_s17  ;;  %s662_s15 = smov %s668_s18 }
  0xf3   :  { %12 = sbr.rel (!%p10_p8) target bundleno = 3 (0x3), region = 64 }

// kernel: up_block_forward.3
= control target key start
LH: loop header
LB: loop body
LE: loop exit
PB: predicated region body
PF: predicated region fallthrough
CT: control target
= control target key end

     0   :  { %s2969_s17 = smov 0   ;;  %s3895_s0 = inlined_call_operand.vmem [shape: f32[2,8,8,32], index: 0, kind: input, shape index: {}]   ;;  %s3896_s1 = inlined_call_operand.vmem [shape: f32[1,32], index: 1, kind: input, shape index: {}]   ;;  %s3897_s2 = inlined_call_operand.vmem [shape: f32[1,32], index: 2, kind: input, shape index: {}]   ;;  %s3898_s3 = inlined_call_operand.vmem [shape: bf16[288,32], index: 3, kind: input, shape index: {}]   ;;  %s3899_s4 = inlined_call_operand.vmem [shape: f32[1,32], index: 4, kind: input, shape index: {}]   ;;  %s3900_s5 = inlined_call_operand.vmem [shape: f32[1,32], index: 5, kind: input, shape index: {}]   ;;  %s3901_s6 = inlined_call_operand.vmem [shape: f32[1,32], index: 6, kind: input, shape index: {}]   ;;  %s3902_s7 = inlined_call_operand.vmem [shape: bf16[288,32], index: 7, kind: input, shape index: {}]   ;;  %s3903_s8 = inlined_call_operand.vmem [shape: f32[1,32], index: 8, kind: input, shape index: {}]   ;;  %s3904_s9 = inlined_call_operand.vmem [shape: bf16[32,32], index: 9, kind: input, shape index: {}]   ;;  %s3905_s10 = inlined_call_operand.vmem [shape: f32[1,32], index: 10, kind: input, shape index: {}]   ;;  %s3906_s11 = inlined_call_operand.vmem [shape: f32[2,8,8,32], index: 11, kind: output, shape index: {}]  }
   0x1 LB: > { %s2355_s18 = sadd.s32 4294967295, %s2903_s17   ;;  %p2359_p0 = scmp.ge.s32.totalorder %s2903_s17, 1  ;;  %s2903_s17 = sphi %s2969_s17, %s21_s17  }
   0x2   : > { %p337_p1 = scmp.lt.s32.totalorder %s2903_s17, 3 }
   0x4   : > { %p338_p2 = pnand %p2359_p0, %p337_p1 }
   0x5   : > { %p2977_p3 = scmp.lt.s32.totalorder (!%p338_p2), %s2355_s18, 1  ;;  %vm396_vm0 = vcmask (!%p338_p2), 261120   ;;  %vm398_vm1 = vcmask (!%p338_p2), 254976   ;;  %v2905_v0 = vmov (!%p338_p2), 0.0   ;;  %v2783_v57 = vld [vmem:[%s3898_s3 + $0x40] sm:$0xff] (!%p338_p2)   ;;  %v2785_v59 = vld [vmem:[%s3898_s3 + $0x48] sm:$0xff] (!%p338_p2)  }
   0x6   : > { %341 = sbr.rel (%p338_p2) target bundleno = 1031 (0x407), region = 64  ;;  %402 = vst.msk [vmem:[#allocation2 + $0x20] sm:$0xff] (!%p338_p2), %vm396_vm0, %v2905_v0  ;;  %404 = vst.msk [vmem:[#allocation2 + $0x30] sm:$0xff] (!%p338_p2), %vm396_vm0, %v2905_v0  ;;  %v2784_v58 = vld [vmem:[%s3898_s3] sm:$0xff] (!%p338_p2)   ;;  %2613 = vmatprep.subr.bf16.mxu0 (!%p338_p2), %v2783_v57  ;;  %v2786_v63 = vld [vmem:[%s3898_s3 + $0x8] sm:$0xff] (!%p338_p2)   ;;  %vm805_vm4 = vcmask (!%p338_p2), 1042432  }
   0x7   : > { %403 = vst.msk [vmem:[#allocation2 + $0x28] sm:$0x3] (!%p338_p2), %vm398_vm1, %v2905_v0  ;;  %405 = vst.msk [vmem:[#allocation2 + $0x38] sm:$0x3] (!%p338_p2), %vm398_vm1, %v2905_v0  ;;  %2614 = vmatpush3.bf16.msra.mxu0 (!%p338_p2), %v2784_v58  ;;  %vm690_vm2 = vsmask.f32 (!%p338_p2), 3328 }
   0x8   : > { %397 = vst.msk [vmem:[#allocation2] sm:$0xff] (!%p338_p2), %vm396_vm0, %v2905_v0  ;;  %400 = vst.msk [vmem:[#allocation2 + $0x10] sm:$0xff] (!%p338_p2), %vm396_vm0, %v2905_v0  ;;  %2615 = vmatprep.subr.bf16.mxu0 (!%p338_p2), %v2785_v59  ;;  %vm691_vm3 = vsmask.f32 (!%p338_p2), 7440  ;;  %vm806_vm5 = vcmask (!%p338_p2), 1046532   ;;  %s2906_s16 = smov (!%p338_p2), 64  }
   0x9   : > { %399 = vst.msk [vmem:[#allocation2 + $0x8] sm:$0x3] (!%p338_p2), %vm398_vm1, %v2905_v0  ;;  %401 = vst.msk [vmem:[#allocation2 + $0x18] sm:$0x3] (!%p338_p2), %vm398_vm1, %v2905_v0  ;;  %s2907_s25 = smov (!%p338_p2), 96   ;;  %s2908_s15 = smov (!%p338_p2), 32  }
   0xa   : > { %406 = vst.msk [vmem:[#allocation2 + $0x40] sm:$0xff] (!%p338_p2), %vm396_vm0, %v2905_v0  ;;  %408 = vst.msk [vmem:[#allocation2 + $0x50] sm:$0xff] (!%p338_p2), %vm396_vm0, %v2905_v0  ;;  %vm993_vm8 = vcmask (!%p338_p2), 523264   ;;  %vm1002_vm9 = vcmask (!%p338_p2), 785408  }
   0xb   : > { %407 = vst.msk [vmem:[#allocation2 + $0x48] sm:$0x3] (!%p338_p2), %vm398_vm1, %v2905_v0  ;;  %409 = vst.msk [vmem:[#allocation2 + $0x58] sm:$0x3] (!%p338_p2), %vm398_vm1, %v2905_v0  ;;  %2616 = vmatpush3.bf16.msra.mxu0 (!%p338_p2), %v2786_v63 }
   0xc   : > { %410 = vst.msk [vmem:[#allocation2 + $0x60] sm:$0xff] (!%p338_p2), %vm396_vm0, %v2905_v0  ;;  %412 = vst.msk [vmem:[#allocation2 + $0x70] sm:$0xff] (!%p338_p2), %vm396_vm0, %v2905_v0 }
   0xd   : > { %411 = vst.msk [vmem:[#allocation2 + $0x68] sm:$0x3] %vm398_vm1, %v2905_v0  ;;  %413 = vst.msk [vmem:[#allocation2 + $0x78] sm:$0x3] %vm398_vm1, %v2905_v0  ;;  %s3913_s18 = smov (!%p2977_p3, %s2355_s18), 1 }
   0xe   : > { %414 = vst.msk [vmem:[#allocation2 + $0x80] sm:$0xff] %vm396_vm0, %v2905_v0  ;;  %416 = vst.msk [vmem:[#allocation2 + $0x90] sm:$0xff] %vm396_vm0, %v2905_v0  ;;  %s2553_s20 = sshll.u32 %s3913_s18, 6 }
   0xf   : > { %415 = vst.msk [vmem:[#allocation2 + $0x88] sm:$0x3] %vm398_vm1, %v2905_v0  ;;  %417 = vst.msk [vmem:[#allocation2 + $0x98] sm:$0x3] %vm398_vm1, %v2905_v0  ;;  %s3011_s23 = scalar_lea.vmem %s3895_s0, %s2553_s20  ;;  %s3870_s22 = scalar_lea.vmem %s3906_s11, %s2553_s20 }
  0x10   : > { %v388_v1 = vld [vmem:[%s3011_s23] sm:$0xff]  ;;  %v389_v2 = vld [vmem:[%s3011_s23 + $0x8] sm:$0xff]  ;;  %v390_v3 = vld [vmem:[%s3011_s23 + $0x10] sm:$0xff] }
  0x11   : > { %v391_v4 = vld [vmem:[%s3011_s23 + $0x18] sm:$0xff]  ;;  %v420_v5 = vsel %vm396_vm0, %v388_v1, 0.0  ;;  %v421_v6 = vsel %vm396_vm0, %v389_v2, 0.0  ;;  %v423_v7 = vsel %vm396_vm0, %v390_v3, 0.0  ;;  %v392_v8 = vld [vmem:[%s3011_s23 + $0x20] sm:$0xff]  ;;  %v393_v10 = vld [vmem:[%s3011_s23 + $0x28] sm:$0xff] }
  0x12   : > { %v422_v9 = vadd.f32 %v421_v6, %v420_v5  ;;  %v425_v11 = vsel %vm396_vm0, %v391_v4, 0.0  ;;  %v427_v13 = vsel %vm396_vm0, %v392_v8, 0.0  ;;  %v394_v14 = vld [vmem:[%s3011_s23 + $0x30] sm:$0xff]  ;;  %v429_v16 = vsel %vm396_vm0, %v393_v10, 0.0  ;;  %v395_v17 = vld [vmem:[%s3011_s23 + $0x38] sm:$0xff]  ;;  %vm3113_vm6 = vmor %vm690_vm2, %vm691_vm3 }
  0x13   : > { %v431_v19 = vsel %vm396_vm0, %v394_v14, 0.0  ;;  %v433_v21 = vsel %vm396_vm0, %v395_v17, 0.0  ;;  %vm3131_vm7 = vmor %vm805_vm4, %vm806_vm5 }
  0x14   : > { %v424_v12 = vadd.f32 %v423_v7, %v422_v9 }
  0x16   : > { %v426_v15 = vadd.f32 %v425_v11, %v424_v12  ;;  %v2364_v12 = vld [vmem:[%s3896_s1] ss:$0 sm:$0xff] }
  0x18   : > { %v428_v18 = vadd.f32 %v427_v13, %v426_v15 }
  0x1a   : > { %v430_v20 = vadd.f32 %v429_v16, %v428_v18 }
  0x1c   : > { %v432_v22 = vadd.f32 %v431_v19, %v430_v20 }
  0x1e   : > { %v434_v23 = vadd.f32 %v433_v21, %v432_v22 }
  0x20   : > { %v435_v24 = vrot.slane %v434_v23, 4 }
  0x22   : > { %v436_v25 = vadd.f32 %v435_v24, %v434_v23 }
  0x24   : > { %v437_v26 = vrot.slane %v436_v25, 2 }
  0x26   : > { %v438_v27 = vadd.f32 %v437_v26, %v436_v25 }
  0x28   : > { %v439_v28 = vrot.slane %v438_v27, 1 }
  0x2a   : > { %v440_v29 = vadd.f32 %v439_v28, %v438_v27 }
  0x2c   : > { %v442_v30 = vmul.f32 0.015625, %v440_v29 }
  0x2e   : > { %v443_v31 = vsub.f32 %v388_v1, %v442_v30  ;;  %v444_v32 = vsub.f32 %v389_v2, %v442_v30  ;;  %v445_v33 = vsub.f32 %v390_v3, %v442_v30  ;;  %v446_v34 = vsub.f32 %v391_v4, %v442_v30  ;;  %v2787_v1 = vld [vmem:[%s3898_s3 + $0x50] sm:$0xff]  }
  0x2f   : > { %v447_v35 = vsub.f32 %v392_v8, %v442_v30  ;;  %v448_v36 = vsub.f32 %v393_v10, %v442_v30  ;;  %v449_v41 = vsub.f32 %v394_v14, %v442_v30  ;;  %v450_v47 = vsub.f32 %v395_v17, %v442_v30  ;;  %2617 = vmatprep.subr.bf16.mxu0 %v2787_v1  ;;  %v2365_v17 = vld [vmem:[%s3897_s2] ss:$0 sm:$0xff] }
  0x30   : > { %v451_v37 = vmul.f32 %v443_v31, %v443_v31  ;;  %v452_v38 = vmul.f32 %v444_v32, %v444_v32  ;;  %v453_v39 = vmul.f32 %v445_v33, %v445_v33  ;;  %v454_v40 = vmul.f32 %v446_v34, %v446_v34 }
  0x31   : > { %v455_v42 = vmul.f32 %v447_v35, %v447_v35  ;;  %v456_v48 = vmul.f32 %v448_v36, %v448_v36  ;;  %v457_v51 = vmul.f32 %v449_v41, %v449_v41  ;;  %v458_v54 = vmul.f32 %v450_v47, %v450_v47 }
  0x32   : > { %v459_v43 = vsel %vm396_vm0, %v451_v37, 0.0  ;;  %v460_v44 = vsel %vm396_vm0, %v452_v38, 0.0  ;;  %v462_v45 = vsel %vm396_vm0, %v453_v39, 0.0  ;;  %v464_v49 = vsel %vm396_vm0, %v454_v40, 0.0 }
  0x33   : > { %v461_v46 = vadd.f32 %v460_v44, %v459_v43  ;;  %v466_v52 = vsel %vm396_vm0, %v455_v42, 0.0  ;;  %v468_v55 = vsel %vm396_vm0, %v456_v48, 0.0  ;;  %v470_v60 = vsel %vm396_vm0, %v457_v51, 0.0 }
  0x34   : > { %v472_v62 = vsel %vm396_vm0, %v458_v54, 0.0 }
  0x35   : > { %v463_v50 = vadd.f32 %v462_v45, %v461_v46 }
  0x37   : > { %v465_v53 = vadd.f32 %v464_v49, %v463_v50  ;;  %v3076_v49 = vld [vmem:[#allocation2] sm:$0xff] }
  0x39   : > { %v467_v56 = vadd.f32 %v466_v52, %v465_v53 }
  0x3b   : > { %v469_v61 = vadd.f32 %v468_v55, %v467_v56  ;;  %v3080_v56 = vpack.c.bf16 %v3076_v49, %v3076_v49 }
  0x3d   : > { %v471_v0 = vadd.f32 %v470_v60, %v469_v61  ;;  %v694_v63 = vshrl.u32 %v3080_v56, 16 }
  0x3f   : > { %v473_v2 = vadd.f32 %v472_v62, %v471_v0  ;;  %v697_v0 = vshll.u32 %v3080_v56, 16 }
  0x41   : > { %v474_v3 = vrot.slane %v473_v2, 4 }
  0x43   : > { %v475_v4 = vadd.f32 %v474_v3, %v473_v2  ;;  %v621_v2 = vld [vmem:[#allocation2 + $0x8] sm:$0x3]  ;;  %v696_v3 = vrot.slane %v694_v63, 4 }
  0x45   : > { %v476_v5 = vrot.slane %v475_v4, 2 }
  0x47   : > { %v477_v6 = vadd.f32 %v476_v5, %v475_v4  ;;  %v699_v4 = vrot.slane %v697_v0, 5 }
  0x49   : > { %v478_v7 = vrot.slane %v477_v6, 1 }
  0x4b   : > { %v479_v8 = vadd.f32 %v478_v7, %v477_v6  ;;  %v2788_v6 = vld [vmem:[%s3898_s3 + $0x10] sm:$0xff]  }
  0x4c   : > { %2618 = vmatpush3.bf16.msra.mxu0 %v2788_v6 }
  0x4d   : > { %v480_v9 = vmul.f32 0.015625, %v479_v8 }
  0x4f   : > { %v481_v10 = vadd.f32 1e-05, %v480_v9  ;;  %v2556_v9 = vpack.c.bf16 %v621_v2, %v621_v2 }
  0x51   : > { %2821 = vrsqrt.f32 %v481_v10 }
  0x5b   : > { %v2822_v11 = vpop.eup %2821 }
  0x5c   : > { %v484_v13 = vmul.f32 %v2822_v11, %v444_v32  ;;  %v485_v14 = vmul.f32 %v2822_v11, %v445_v33  ;;  %v486_v15 = vmul.f32 %v2822_v11, %v446_v34  ;;  %v487_v16 = vmul.f32 %v2822_v11, %v447_v35 }
  0x5d   : > { %v483_v18 = vmul.f32 %v2822_v11, %v443_v31  ;;  %v488_v19 = vmul.f32 %v2822_v11, %v448_v36  ;;  %v489_v20 = vmul.f32 %v2822_v11, %v449_v41  ;;  %v490_v21 = vmul.f32 %v2822_v11, %v450_v47 }
  0x5e   : > { %v498_v22 = vmul.f32 %v2364_v12, %v484_v13  ;;  %v499_v23 = vmul.f32 %v2364_v12, %v485_v14  ;;  %v500_v24 = vmul.f32 %v2364_v12, %v486_v15  ;;  %v501_v25 = vmul.f32 %v2364_v12, %v487_v16 }
  0x5f   : > { %v497_v26 = vmul.f32 %v2364_v12, %v483_v18  ;;  %v502_v27 = vmul.f32 %v2364_v12, %v488_v19  ;;  %v503_v28 = vmul.f32 %v2364_v12, %v489_v20  ;;  %v504_v29 = vmul.f32 %v2364_v12, %v490_v21  ;;  %v2789_v12 = vld [vmem:[%s3898_s3 + $0x58] sm:$0xff]  }
  0x60   : > { %v512_v30 = vadd.f32 %v2365_v17, %v498_v22  ;;  %v513_v32 = vadd.f32 %v2365_v17, %v499_v23  ;;  %v3058_v33 = vadd.f32 %v2365_v17, %v500_v24  ;;  %v3060_v34 = vadd.f32 %v2365_v17, %v501_v25  ;;  %2619 = vmatprep.subr.bf16.mxu0 %v2789_v12  ;;  %v2790_v19 = vld [vmem:[%s3898_s3 + $0x18] sm:$0xff]   ;;  %v3099_v22 = vld [vmem:[#allocation2 + $0x90] sm:$0xff] }
  0x61   : > { %v3062_v35 = vadd.f32 %v2365_v17, %v497_v26  ;;  %v3064_v31 = vadd.f32 %v2365_v17, %v502_v27  ;;  %v3067_v39 = vadd.f32 %v2365_v17, %v503_v28  ;;  %v3070_v41 = vadd.f32 %v2365_v17, %v504_v29  ;;  %2620 = vmatpush3.bf16.msra.mxu0 %v2790_v19 }
  0x62   : > { %v2367_v36 = vmul.f32 -1.442695, %v512_v30  ;;  %v2368_v37 = vmul.f32 -1.442695, %v513_v32  ;;  %v2369_v38 = vmul.f32 -1.442695, %v3058_v33  ;;  %v700_v15 = vor.u32 %v699_v4, %v696_v3 }
  0x63   : > { %v2370_v40 = vmul.f32 -1.442695, %v3060_v34  ;;  %v2366_v42 = vmul.f32 -1.442695, %v3062_v35  ;;  %v2371_v43 = vmul.f32 -1.442695, %v3064_v31 }
  0x64   : > { %2823 = vpow2.f32 %v2367_v36  ;;  %v2372_v44 = vmul.f32 -1.442695, %v3067_v39  ;;  %v2373_v45 = vmul.f32 -1.442695, %v3070_v41  ;;  %v703_v16 = vshll.u32 %v2556_v9, 16 }
  0x65   : > { %2825 = vpow2.f32 %v2368_v37  ;;  %v2390_v24 = vrot.slane %v3080_v56, 9  ;;  %v810_v27 = vrot.slane %v2556_v9, 5  ;;  %v3105_v28 = vrot.slane %v700_v15, 4 }
  0x66   : > { %2827 = vpow2.f32 %v2369_v38  ;;  %v3107_v29 = vrot.slane %v703_v16, 5  ;;  %v2795_v16 = vld [vmem:[%s3898_s3 + $0x70] sm:$0xff]  }
  0x67   : > { %2829 = vpow2.f32 %v2370_v40 }
  0x68   : > { %2831 = vpow2.f32 %v2366_v42 }
  0x69   : > { %2833 = vpow2.f32 %v2371_v43  ;;  %v3144_v43 = vsel %vm3131_vm7, %v2390_v24, %v810_v27 }
  0x6a   : > { %2835 = vpow2.f32 %v2372_v44  ;;  %v706_v44 = vsel %vm3113_vm6, %v3105_v28, %v3107_v29 }
  0x6b   : > { %2837 = vpow2.f32 %v2373_v45 }
  0x6e   : > { %v2824_v46 = vpop.eup %2823 }
  0x6f   : > { %v2826_v47 = vpop.eup %2825  ;;  %v544_v48 = vadd.f32 1.0, %v2824_v46 }
  0x70   : > { %v2828_v50 = vpop.eup %2827  ;;  %v545_v51 = vadd.f32 1.0, %v2826_v47 }
  0x71   : > { %v2830_v52 = vpop.eup %2829  ;;  %2839 = vrcp.f32 %v544_v48  ;;  %v546_v53 = vadd.f32 1.0, %v2828_v50 }
  0x72   : > { %v2832_v54 = vpop.eup %2831  ;;  %2841 = vrcp.f32 %v545_v51  ;;  %v547_v55 = vadd.f32 1.0, %v2830_v52 }
  0x73   : > { %v2834_v57 = vpop.eup %2833  ;;  %2843 = vrcp.f32 %v546_v53  ;;  %v543_v58 = vadd.f32 1.0, %v2832_v54 }
  0x74   : > { %v2836_v59 = vpop.eup %2835  ;;  %2845 = vrcp.f32 %v547_v55  ;;  %v548_v60 = vadd.f32 1.0, %v2834_v57 }
  0x75   : > { %v2838_v61 = vpop.eup %2837  ;;  %2847 = vrcp.f32 %v543_v58  ;;  %v549_v62 = vadd.f32 1.0, %v2836_v59  ;;  %v2793_v58 = vld [vmem:[%s3898_s3 + $0x68] sm:$0xff]  }
  0x76   : > { %2849 = vrcp.f32 %v548_v60  ;;  %v550_v1 = vadd.f32 1.0, %v2838_v61 }
  0x77   : > { %2851 = vrcp.f32 %v549_v62 }
  0x78   : > { %2853 = vrcp.f32 %v550_v1  ;;  %v2794_v1 = vld [vmem:[%s3898_s3 + $0x28] sm:$0xff]  }
  0x7b   : > { %v2840_v5 = vpop.eup %2839 }
  0x7c   : > { %v2842_v7 = vpop.eup %2841  ;;  %v568_v8 = vmul.f32 %v2840_v5, %v512_v30 }
  0x7d   : > { %v2844_v10 = vpop.eup %2843  ;;  %v569_v11 = vmul.f32 %v2842_v7, %v513_v32  ;;  %v2893_v32 = vld [vmem:[%s3011_s23 + $0x20] sm:$0xff] }
  0x7e   : > { %v2846_v13 = vpop.eup %2845  ;;  %577 = vst.msk [vmem:[#allocation2 + $0x21] sm:$0xff] %vm396_vm0, %v568_v8  ;;  %v570_v14 = vmul.f32 %v2844_v10, %v3058_v33 }
  0x7f   : > { %v2848_v17 = vpop.eup %2847  ;;  %578 = vst.msk [vmem:[#allocation2 + $0x31] sm:$0xff] %vm396_vm0, %v569_v11  ;;  %v571_v18 = vmul.f32 %v2846_v13, %v3060_v34  ;;  %v3120_v34 = vpack.c.bf16 %v3099_v22, %v3099_v22 }
  0x80   : > { %v2850_v20 = vpop.eup %2849  ;;  %579 = vst.msk [vmem:[#allocation2 + $0x41] sm:$0xff] %vm396_vm0, %v570_v14  ;;  %v567_v21 = vmul.f32 %v2848_v17, %v3062_v35  ;;  %v2791_v35 = vld [vmem:[%s3898_s3 + $0x60] sm:$0xff]  }
  0x81   : > { %v2852_v23 = vpop.eup %2851  ;;  %580 = vst.msk [vmem:[#allocation2 + $0x51] sm:$0xff] %vm396_vm0, %v571_v18  ;;  %v572_v25 = vmul.f32 %v2850_v20, %v3064_v31  ;;  %v2792_v31 = vld [vmem:[%s3898_s3 + $0x20] sm:$0xff]   ;;  %2621 = vmatprep.subr.bf16.mxu0 %v2791_v35  ;;  %v869_v51 = vshrl.u32 %v3120_v34, 16  ;;  %v2403_v35 = vrot.slane %v3120_v34, 9 }
  0x82   : > { %v2854_v26 = vpop.eup %2853  ;;  %576 = vst.msk [vmem:[#allocation2 + $0x11] sm:$0xff] %vm396_vm0, %v567_v21  ;;  %v573_v30 = vmul.f32 %v2852_v23, %v3067_v39  ;;  %2622 = vmatpush3.bf16.msra.mxu0 %v2792_v31  ;;  %v2796_v21 = vld [vmem:[%s3898_s3 + $0x30] sm:$0xff]  }
  0x83   : > { %581 = vst.msk [vmem:[#allocation2 + $0x61] sm:$0xff] %vm396_vm0, %v572_v25  ;;  %v574_v33 = vmul.f32 %v2854_v26, %v3070_v41  ;;  %2623 = vmatprep.subr.bf16.mxu0 %v2793_v58  ;;  %v872_v26 = vshll.u32 %v3120_v34, 16 }
  0x84   : > { %582 = vst.msk [vmem:[#allocation2 + $0x71] sm:$0xff] %vm396_vm0, %v573_v30 }
  0x85   : > { %v624_v36 = vld [vmem:[#allocation2 + $0x20] sm:$0xff]  ;;  %v625_v37 = vld [vmem:[#allocation2 + $0x28] sm:$0x3]  ;;  %583 = vst.msk [vmem:[#allocation2 + $0x81] sm:$0xff] %vm396_vm0, %v574_v33 }
  0x86   : > { %v3136_v39 = vld [vmem:[#allocation2 + $0x30] sm:$0xff]  ;;  %v3138_v40 = vpack.c.bf16 %v624_v36, %v624_v36  ;;  %v3140_v41 = vpack.c.bf16 %v625_v37, %v625_v37  ;;  %v627_v42 = vld [vmem:[#allocation2 + $0x38] sm:$0x3]  ;;  %2624 = vmatpush3.bf16.msra.mxu0 %v2794_v1 }
  0x87   : > { %v3152_v45 = vpack.c.bf16 %v3136_v39, %v3136_v39  ;;  %v3155_v46 = vpack.c.bf16 %v3136_v39, %v624_v36  ;;  %v3157_v47 = vld [vmem:[#allocation2 + $0x40] sm:$0xff]  ;;  %v629_v48 = vld [vmem:[#allocation2 + $0x48] sm:$0x3]  ;;  %v3159_v50 = vpack.c.bf16 %v627_v42, %v627_v42  ;;  %2625 = vmatprep.subr.bf16.mxu0 %v2795_v16  ;;  %v2797_v42 = vld [vmem:[%s3898_s3 + $0x78] sm:$0xff]  }
  0x88   : > { %v3162_v52 = vld [vmem:[#allocation2 + $0x50] sm:$0xff]  ;;  %v3166_v53 = vpack.c.bf16 %v3157_v47, %v3157_v47  ;;  %v2392_v54 = vrot.slane %v3138_v40, 9  ;;  %v818_v55 = vrot.slane %v3140_v41, 5  ;;  %v2580_v56 = vpack.c.bf16 %v3157_v47, %v3136_v39  ;;  %v631_v57 = vld [vmem:[#allocation2 + $0x58] sm:$0x3] }
  0x89   : > { %961 = vrot.lane.b32.xlu1 %v3155_v46, %s2906_s16  ;;  %v3179_v59 = vpack.c.bf16 %v3162_v52, %v3162_v52  ;;  %v3183_v60 = vpack.c.bf16 %v3162_v52, %v3157_v47  ;;  %v3185_v61 = vld [vmem:[#allocation2 + $0x10] sm:$0xff]  ;;  %v623_v62 = vld [vmem:[#allocation2 + $0x18] sm:$0x3]  ;;  %v3187_v63 = vpack.c.bf16 %v629_v48, %v629_v48  ;;  %v2393_v0 = vrot.slane %v3152_v45, 9  ;;  %v2798_v47 = vld [vmem:[%s3898_s3 + $0x80] sm:$0xff]  }
  0x8a   : > { %v2579_v2 = vpack.c.bf16 %v624_v36, %v3185_v61  ;;  %v2557_v3 = vpack.c.bf16 %v3185_v61, %v3185_v61  ;;  %v2558_v4 = vpack.c.bf16 %v623_v62, %v623_v62  ;;  %v819_v5 = vsel %vm3131_vm7, %v2392_v54, %v818_v55  ;;  %v3198_v6 = vld [vmem:[#allocation2 + $0x60] sm:$0xff]  ;;  %v633_v7 = vld [vmem:[#allocation2 + $0x68] sm:$0x3]  ;;  %2626 = vmatpush3.bf16.msra.mxu0 %v2796_v21  ;;  %v2799_v48 = vld [vmem:[%s3898_s3 + $0x38] sm:$0xff]  }
  0x8b   : > { %963 = vrot.lane.b32.xlu0 %v3183_v60, %s2906_s16  ;;  %v822_v8 = vrot.slane %v3159_v50, 5  ;;  %v2394_v9 = vrot.slane %v3166_v53, 9  ;;  %v826_v10 = vrot.slane %v3187_v63, 5  ;;  %v3205_v11 = vpack.c.bf16 %v631_v57, %v631_v57  ;;  %2627 = vmatprep.subr.bf16.mxu0 %v2797_v42 }
  0x8c   : > { %v2391_v12 = vrot.slane %v2557_v3, 9  ;;  %v814_v13 = vrot.slane %v2558_v4, 5  ;;  %v3209_v14 = vpack.c.bf16 %v3198_v6, %v3198_v6  ;;  %v3211_v15 = vpack.c.bf16 %v633_v7, %v633_v7  ;;  %2711 = vmatprep.subr.bf16.mxu1 %v2798_v47 }
  0x8d   : > { %934 = vrot.lane.b32.xlu1 %v2579_v2, %s2907_s25  ;;  %v823_v17 = vsel %vm3131_vm7, %v2393_v0, %v822_v8  ;;  %v827_v18 = vsel %vm3131_vm7, %v2394_v9, %v826_v10  ;;  %v2395_v19 = vrot.slane %v3179_v59, 9  ;;  %v830_v20 = vrot.slane %v3205_v11, 5  ;;  %2712 = vmatpush3.bf16.msra.mxu1 %v2798_v47 }
  0x8e   : > { %v815_v23 = vsel %vm3131_vm7, %v2391_v12, %v814_v13  ;;  %v2396_v24 = vrot.slane %v3209_v14, 9  ;;  %v834_v25 = vrot.slane %v3211_v15, 5  ;;  %v2425_v30 = vcombine.low %v823_v17, %v827_v18  ;;  %2628 = vmatpush3.bf16.msra.mxu0 %v2799_v48 }
  0x8f   : > { %v2424_v27 = vcombine.low %v815_v23, %v819_v5  ;;  %v831_v33 = vsel %vm3131_vm7, %v2395_v19, %v830_v20  ;;  %v708_v36 = vshrl.u32 %v2557_v3, 16  ;;  %v711_v37 = vshll.u32 %v2557_v3, 16 }
  0x90   : > { %v3236_v31 = vsel %vm3131_vm7, %v2396_v24, %v834_v25  ;;  %v717_v39 = vshll.u32 %v2558_v4, 16  ;;  %v2412_v54 = vcombine.low %v3144_v43, %v815_v23  ;;  %v2413_v55 = vcombine.low %v819_v5, %v823_v17  ;;  %v3256_v43 = vld [vmem:[#allocation2 + $0x70] sm:$0xff] }
  0x91   : > { %952 = vrot.lane.b32.xlu0 %v2424_v27, %s2908_s15  ;;  %936 = vrot.lane.b32.xlu1 %v2580_v56, %s2907_s25  ;;  %v722_v57 = vshrl.u32 %v3138_v40, 16  ;;  %v725_v58 = vshll.u32 %v3138_v40, 16  ;;  %v2426_v62 = vcombine.low %v831_v33, %v3236_v31  ;;  %v710_v0 = vrot.slane %v708_v36, 4 }
  0x92   : > { %v713_v1 = vrot.slane %v711_v37, 5  ;;  %v731_v2 = vshll.u32 %v3140_v41, 16  ;;  %v736_v7 = vshrl.u32 %v3152_v45, 16  ;;  %v739_v56 = vshll.u32 %v3152_v45, 16  ;;  %v2800_v41 = vld [vmem:[%s3898_s3 + $0x88] sm:$0xff]   ;;  %2715 = vmatprep.mubr.msk.bf16.mxu1 %vm396_vm0, %v2413_v55 }
  0x93   : > { %v724_v3 = vrot.slane %v722_v57, 4  ;;  %v727_v4 = vrot.slane %v725_v58, 5  ;;  %v719_v40 = vrot.slane %v717_v39, 5  ;;  %v2414_v8 = vcombine.low %v827_v18, %v831_v33  ;;  %2713 = vmatprep.subr.bf16.mxu1 %v2800_v41  ;;  %v635_v33 = vld [vmem:[#allocation2 + $0x78] sm:$0x3]  ;;  %v3290_v39 = vld [vmem:[#allocation2 + $0x80] sm:$0xff] }
  0x94   : > { %v714_v5 = vor.u32 %v713_v1, %v710_v0  ;;  %v745_v9 = vshll.u32 %v3159_v50, 16  ;;  %v733_v10 = vrot.slane %v731_v2, 5  ;;  %v738_v12 = vrot.slane %v736_v7, 4  ;;  %2714 = vmatpush3.bf16.msra.mxu1 %v2800_v41  ;;  %v639_v57 = vld [vmem:[#allocation2 + $0x98] sm:$0x3] }
  0x95   : > { %954 = vrot.lane.b32.xlu0 %v2425_v30, %s2908_s15  ;;  %922 = vrot.lane.b32.xlu1 %v2412_v54, %s2906_s16  ;;  %v728_v45 = vor.u32 %v727_v4, %v724_v3  ;;  %v741_v13 = vrot.slane %v739_v56, 5  ;;  %v3267_v18 = vpack.c.bf16 %v3256_v43, %v3256_v43  ;;  %v750_v50 = vshrl.u32 %v3166_v53, 16  ;;  %v637_v54 = vld [vmem:[#allocation2 + $0x88] sm:$0x3] }
  0x96   : > { %v715_v16 = vrot.slane %v714_v5, 4  ;;  %v747_v17 = vrot.slane %v745_v9, 5  ;;  %v753_v21 = vshll.u32 %v3166_v53, 16  ;;  %v759_v23 = vshll.u32 %v3187_v63, 16 }
  0x97   : > { %v729_v19 = vrot.slane %v728_v45, 4  ;;  %v742_v20 = vor.u32 %v741_v13, %v738_v12  ;;  %v752_v25 = vrot.slane %v750_v50, 4  ;;  %v764_v27 = vshrl.u32 %v3179_v59, 16  ;;  %2716 = vmatmul.mubr.msk.bf16.vlgmr.msra.gmra.mrb[0].mxu1 %vm396_vm0, %v2414_v8 }
  0x98   : > { %v3274_v24 = vsel %vm3113_vm6, %v715_v16, %v719_v40  ;;  %v767_v30 = vshll.u32 %v3179_v59, 16  ;;  %v755_v37 = vrot.slane %v753_v21, 5  ;;  %v761_v42 = vrot.slane %v759_v23, 5 }
  0x99   : > { %956 = vrot.lane.b32.xlu0 %v2426_v62, %s2908_s15  ;;  %924 = vrot.lane.b32.xlu1 %v2413_v55, %s2906_s16  ;;  %v2408_v53 = vcombine.low %v706_v44, %v3274_v24  ;;  %v3288_v63 = vsel %vm3113_vm6, %v729_v19, %v733_v10  ;;  %v743_v36 = vrot.slane %v742_v20, 4  ;;  %v766_v47 = vrot.slane %v764_v27, 4 }
  0x9a   : > { %v2420_v59 = vcombine.low %v3274_v24, %v3288_v63  ;;  %v769_v48 = vrot.slane %v767_v30, 5  ;;  %v756_v29 = vor.u32 %v755_v37, %v752_v25  ;;  %v773_v44 = vshll.u32 %v3205_v11, 16 }
  0x9b   : > { %v3297_v28 = vsel %vm3113_vm6, %v743_v36, %v747_v17  ;;  %v2570_v55 = vpack.c.bf16 %v635_v33, %v635_v33  ;;  %v2397_v0 = vrot.slane %v3267_v18, 9  ;;  %v2571_v1 = vpack.c.bf16 %v3290_v39, %v3290_v39 }
  0x9c   : > { %v2409_v58 = vcombine.low %v3288_v63, %v3297_v28  ;;  %v770_v62 = vor.u32 %v769_v48, %v766_v47  ;;  %v757_v2 = vrot.slane %v756_v29, 4  ;;  %v775_v3 = vrot.slane %v773_v44, 5 }
  0x9d   : > { %902 = vrot.lane.b32.xlu0 %v2408_v53, %s2908_s15  ;;  %926 = vrot.lane.b32.xlu1 %v2414_v8, %s2906_s16  ;;  %v838_v4 = vrot.slane %v2570_v55, 5  ;;  %v2572_v7 = vpack.c.bf16 %v637_v54, %v637_v54  ;;  %v778_v56 = vshrl.u32 %v3209_v14, 16  ;;  %v781_v5 = vshll.u32 %v3209_v14, 16 }
  0x9e   : > { %v771_v11 = vrot.slane %v770_v62, 4  ;;  %v2574_v40 = vpack.c.bf16 %v639_v57, %v639_v57  ;;  %v3311_v9 = vpack.c.bf16 %v3256_v43, %v3198_v6  ;;  %v3315_v41 = vsel %vm3113_vm6, %v757_v2, %v761_v42 }
  0x9f   : > { %v839_v8 = vsel %vm3131_vm7, %v2397_v0, %v838_v4  ;;  %v787_v45 = vshll.u32 %v3211_v15, 16  ;;  %v2581_v10 = vpack.c.bf16 %v3198_v6, %v3162_v52  ;;  %v2421_v14 = vcombine.low %v3297_v28, %v3315_v41 }
  0xa0   : > { %v2415_v12 = vcombine.low %v3236_v31, %v839_v8  ;;  %v780_v13 = vrot.slane %v778_v56, 4  ;;  %v3329_v16 = vsel %vm3113_vm6, %v771_v11, %v775_v3  ;;  %v2400_v17 = vrot.slane %v2571_v1, 9 }
  0xa1   : > { %971 = vrot.lane.b32.xlu0 %v2409_v58, %s2907_s25  ;;  %904 = vrot.lane.b32.xlu1 %v2409_v58, %s2908_s15  ;;  %v861_v50 = vrot.slane %v2572_v7, 5  ;;  %v783_v15 = vrot.slane %v781_v5, 5  ;;  %v792_v19 = vshrl.u32 %v3267_v18, 16  ;;  %v795_v52 = vshll.u32 %v3267_v18, 16 }
  0xa2   : > { %v801_v6 = vshll.u32 %v2570_v55, 16  ;;  %v871_v31 = vrot.slane %v869_v51, 4  ;;  %2719 = vmatprep.mubr.msk.bf16.mxu1 %vm396_vm0, %v2415_v12  ;;  %v789_v21 = vrot.slane %v787_v45, 5  ;;  %v874_v23 = vrot.slane %v872_v26, 5 }
  0xa3   : > { %v784_v20 = vor.u32 %v783_v15, %v780_v13  ;;  %v846_v25 = vshrl.u32 %v2571_v1, 16  ;;  %v2410_v27 = vcombine.low %v3315_v41, %v3329_v16  ;;  %v794_v30 = vrot.slane %v792_v19, 4 }
  0xa4   : > { %v797_v33 = vrot.slane %v795_v52, 5  ;;  %v849_v53 = vshll.u32 %v2571_v1, 16  ;;  %v862_v51 = vsel %vm3131_vm7, %v2400_v17, %v861_v50  ;;  %v855_v37 = vshll.u32 %v2572_v7, 16 }
  0xa5   : > { %965 = vrot.lane.b32.xlu0 %v3311_v9, %s2906_s16  ;;  %938 = vrot.lane.b32.xlu1 %v2581_v10, %s2907_s25  ;;  %v785_v18 = vrot.slane %v784_v20, 4  ;;  %v848_v36 = vrot.slane %v846_v25, 4  ;;  %v803_v26 = vrot.slane %v801_v6, 5  ;;  %v884_v48 = vrot.slane %v2574_v40, 5 }
  0xa6   : > { %v798_v42 = vor.u32 %v797_v33, %v794_v30  ;;  %v851_v47 = vrot.slane %v849_v53, 5  ;;  %v857_v29 = vrot.slane %v855_v37, 5  ;;  %v2427_v62 = vcombine.low %v839_v8, %v862_v51 }
  0xa7   : > { %v3347_v54 = vsel %vm3113_vm6, %v785_v18, %v789_v21  ;;  %v885_v58 = vsel %vm3131_vm7, %v2403_v35, %v884_v48  ;;  %v875_v3 = vor.u32 %v874_v23, %v871_v31  ;;  %v878_v4 = vshll.u32 %v2574_v40, 16 }
  0xa8   : > { %v799_v44 = vrot.slane %v798_v42, 4  ;;  %v2422_v55 = vcombine.low %v3329_v16, %v3347_v54  ;;  %v852_v57 = vor.u32 %v851_v47, %v848_v36  ;;  %v2430_v0 = vcombine.low %v862_v51, %v885_v58 }
  0xa9   : > { %973 = vrot.lane.b32.xlu0 %v2410_v27, %s2907_s25  ;;  %906 = vrot.lane.b32.xlu1 %v2410_v27, %s2908_s15  ;;  %v876_v11 = vrot.slane %v875_v3, 4  ;;  %v880_v56 = vrot.slane %v878_v4, 5  ;;  %v2583_v5 = vpack.c.bf16 %v3099_v22, %v3290_v39  ;;  %v2582_v40 = vpack.c.bf16 %v3290_v39, %v3256_v43 }
  0xaa   : > { %v3359_v1 = vsel %vm3113_vm6, %v799_v44, %v803_v26  ;;  %v853_v2 = vrot.slane %v852_v57, 4  ;;  %2720 = vmatmul.mubr.msk.bf16.gmra.mrb[4].mxu1 %vm396_vm0, %v2430_v0  ;;  %v2575_v39 = vpack.c.bf16 %v3185_v61, %v3076_v49 }
  0xab   : > { %v2411_v35 = vcombine.low %v3347_v54, %v3359_v1  ;;  %v881_v8 = vsel %vm3113_vm6, %v876_v11, %v880_v56 }
  0xac   : > { %v3364_v34 = vsel %vm3113_vm6, %v853_v2, %v857_v29 }
  0xad   : > { %958 = vrot.lane.b32.xlu0 %v2427_v62, %s2908_s15  ;;  %928 = vrot.lane.b32.xlu1 %v2415_v12, %s2906_s16  ;;  %v2423_v7 = vcombine.low %v3359_v1, %v3364_v34  ;;  %v2429_v45 = vcombine.low %v3364_v34, %v881_v8 }
  0xb1   : > { %975 = vrot.lane.b32.xlu0 %v2411_v35, %s2907_s25  ;;  %908 = vrot.lane.b32.xlu1 %v2411_v35, %s2908_s15 }
  0xb5   : > { %967 = vrot.lane.b32.xlu0 %v2583_v5, %s2906_s16  ;;  %940 = vrot.lane.b32.xlu1 %v2582_v40, %s2907_s25  ;;  %v2431_v40 = vld [vmem:[%s3899_s4] ss:$0 sm:$0xff] }
  0xb9   : > { %977 = vrot.lane.b32.xlu0 %v2429_v45, %s2907_s25 }
  0xfb   : > { %v962_v10 = vpop.permute.xlu1 %961 }
  0xfd   : > { %v964_v12 = vpop.permute.xlu0 %963 }
  0xff   : > { %v935_v13 = vpop.permute.xlu1 %934 }
 0x103   : > { %v953_v17 = vpop.permute.xlu0 %952  ;;  %v937_v50 = vpop.permute.xlu1 %936 }
 0x104   : > { %v1017_v31 = vsel %vm396_vm0, %v2420_v59, %v953_v17 }
 0x105   : > { %v1028_v25 = vsel %vm993_vm8, %v1017_v31, %v962_v10 }
 0x107   : > { %v955_v22 = vpop.permute.xlu0 %954  ;;  %v923_v15 = vpop.permute.xlu1 %922 }
 0x108   : > { %v1020_v59 = vsel %vm396_vm0, %v2421_v14, %v955_v22 }
 0x109   : > { %v1030_v51 = vsel %vm993_vm8, %v1020_v59, %v964_v12 }
 0x10b   : > { %v957_v19 = vpop.permute.xlu0 %956  ;;  %v925_v43 = vpop.permute.xlu1 %924 }
 0x10c   : > { %v1023_v28 = vsel %vm396_vm0, %v2422_v55, %v957_v19 }
 0x10f   : > { %v903_v52 = vpop.permute.xlu0 %902  ;;  %v927_v6 = vpop.permute.xlu1 %926 }
 0x110   : > { %v983_v20 = vsel %vm396_vm0, %v2575_v39, %v903_v52 }
 0x111   : > { %v995_v21 = vsel %vm993_vm8, %v983_v20, %v923_v15 }
 0x112   : > { %v1004_v49 = vsel %vm1002_vm9, %v995_v21, %v935_v13 }
 0x113   : > { %v972_v23 = vpop.permute.xlu0 %971  ;;  %v905_v27 = vpop.permute.xlu1 %904 }
 0x114   : > { %v1036_v30 = vsel %vm1002_vm9, %v1028_v25, %v972_v23  ;;  %v986_v61 = vsel %vm396_vm0, %v3155_v46, %v905_v27 }
 0x115   : > { %1206 = vmatprep.mubr.bf16.mxu0 %v1036_v30  ;;  %v997_v33 = vsel %vm993_vm8, %v986_v61, %v925_v43 }
 0x116   : > { %1207 = vmatmul.mubr.bf16.vlgmr.msra.gmra.mrb[0].mxu0 %v1004_v49  ;;  %v1007_v37 = vsel %vm1002_vm9, %v997_v33, %v937_v50 }
 0x117   : > { %v966_v24 = vpop.permute.xlu0 %965  ;;  %v939_v63 = vpop.permute.xlu1 %938 }
 0x118   : > { %v1032_v14 = vsel %vm993_vm8, %v1023_v28, %v966_v24 }
 0x11b   : > { %v974_v53 = vpop.permute.xlu0 %973  ;;  %v907_v18 = vpop.permute.xlu1 %906 }
 0x11c   : > { %v1039_v36 = vsel %vm1002_vm9, %v1030_v51, %v974_v53  ;;  %v989_v46 = vsel %vm396_vm0, %v3183_v60, %v907_v18 }
 0x11d   : > { %1214 = vmatprep.mubr.bf16.mxu0 %v1039_v36  ;;  %v999_v41 = vsel %vm993_vm8, %v989_v46, %v927_v6 }
 0x11e   : > { %1215 = vmatmul.mubr.bf16.gmra.mrb[4].mxu0 %v1007_v37  ;;  %v1010_v44 = vsel %vm1002_vm9, %v999_v41, %v939_v63 }
 0x11f   : > { %v959_v42 = vpop.permute.xlu0 %958  ;;  %v929_v26 = vpop.permute.xlu1 %928 }
 0x120   : > { %v1026_v16 = vsel %vm396_vm0, %v2423_v7, %v959_v42 }
 0x123   : > { %v976_v47 = vpop.permute.xlu0 %975  ;;  %v909_v29 = vpop.permute.xlu1 %908 }
 0x124   : > { %v1042_v48 = vsel %vm1002_vm9, %v1032_v14, %v976_v47  ;;  %v992_v57 = vsel %vm396_vm0, %v3311_v9, %v909_v29 }
 0x125   : > { %1222 = vmatprep.mubr.bf16.mxu0 %v1042_v48  ;;  %v1001_v0 = vsel %vm993_vm8, %v992_v57, %v929_v26 }
 0x126   : > { %1223 = vmatmul.mubr.bf16.gmra.mrb[8].mxu0 %v1010_v44 }
 0x127   : > { %v968_v60 = vpop.permute.xlu0 %967  ;;  %v941_v54 = vpop.permute.xlu1 %940 }
 0x128   : > { %v1034_v55 = vsel %vm993_vm8, %v1026_v16, %v968_v60  ;;  %v1013_v2 = vsel %vm1002_vm9, %v1001_v0, %v941_v54 }
 0x12b   : > { %v978_v58 = vpop.permute.xlu0 %977 }
 0x12c   : > { %v1045_v62 = vsel %vm1002_vm9, %v1034_v55, %v978_v58 }
 0x12d   : > { %1230 = vmatprep.mubr.bf16.mxu0 %v1045_v62 }
 0x12e   : > { %1231 = vmatmul.mubr.bf16.gmra.mrb[12].mxu0 %v1013_v2 }
 0x16a   : > { %v2717_v3 = vpop.f32.mrb[0].mxu1 }
 0x16b   : > { %v1273_v4 = vpop.f32.mrb[1].mxu1 }
 0x16c   : > { %v2718_v9 = vpop.f32.mrb[2].mxu1 }
 0x16d   : > { %v1276_v35 = vpop.f32.mrb[3].mxu1 }
 0x17d   : > { %v2721_v11 = vpop.f32.mrb[4].mxu1 }
 0x17e   : > { %v1289_v1 = vpop.f32.mrb[5].mxu1 }
 0x17f   : > { %v2722_v34 = vpop.f32.mrb[6].mxu1 }
 0x180   : > { %v1292_v7 = vpop.f32.mrb[7].mxu1 }
 0x1e9   : > { %v2629_v56 = vpop.f32.mrb[0].mxu0 }
 0x1ea   : > { %v2630_v5 = vpop.f32.mrb[1].mxu0 }
 0x1eb   : > { %v2631_v8 = vadd.f32 %v2630_v5, %v2629_v56  ;;  %v2632_v45 = vpop.f32.mrb[2].mxu0  ;;  %v1523_v56 = vld [vmem:[#allocation2 + $0x98] sm:$0x3] }
 0x1ec   : > { %v2633_v10 = vpop.f32.mrb[3].mxu0  ;;  %v3442_v5 = vpack.c.bf16 %v1523_v56, %v1523_v56 }
 0x1ed   : > { %v2634_v12 = vadd.f32 %v2633_v10, %v2632_v45  ;;  %v1209_v13 = vadd.f32 %v2631_v8, %v2431_v40 }
 0x1ef   : > { %v1274_v17 = vadd.f32 %v1273_v4, %v1209_v13  ;;  %v1212_v50 = vadd.f32 %v2634_v12, %v2431_v40 }
 0x1f1   : > { %v1277_v22 = vadd.f32 %v1276_v35, %v1212_v50  ;;  %v2635_v15 = vpop.f32.mrb[4].mxu0  ;;  %v1306_v43 = vsel %vm396_vm0, %v1274_v17, 0.0 }
 0x1f2   : > { %v2636_v19 = vpop.f32.mrb[5].mxu0 }
 0x1f3   : > { %v1307_v39 = vsel %vm396_vm0, %v1277_v22, 0.0  ;;  %v2637_v52 = vadd.f32 %v2636_v19, %v2635_v15  ;;  %v2638_v6 = vpop.f32.mrb[6].mxu0 }
 0x1f4   : > { %v1308_v31 = vadd.f32 %v1307_v39, %v1306_v43  ;;  %v2639_v20 = vpop.f32.mrb[7].mxu0 }
 0x1f5   : > { %v1217_v21 = vadd.f32 %v2637_v52, %v2431_v40  ;;  %v2640_v23 = vadd.f32 %v2639_v20, %v2638_v6 }
 0x1f7   : > { %v1282_v25 = vadd.f32 %v2717_v3, %v1217_v21  ;;  %v1220_v27 = vadd.f32 %v2640_v23, %v2431_v40 }
 0x1f9   : > { %v1309_v30 = vsel %vm396_vm0, %v1282_v25, 0.0  ;;  %v1285_v49 = vadd.f32 %v2718_v9, %v1220_v27  ;;  %v2641_v61 = vpop.f32.mrb[8].mxu0  ;;  %v3436_v9 = vld [vmem:[#allocation2 + $0x90] sm:$0xff] }
 0x1fa   : > { %v2642_v24 = vpop.f32.mrb[9].mxu0  ;;  %v1310_v63 = vadd.f32 %v1309_v30, %v1308_v31 }
 0x1fb   : > { %v2643_v59 = vadd.f32 %v2642_v24, %v2641_v61  ;;  %v2644_v33 = vpop.f32.mrb[10].mxu0  ;;  %v1311_v53 = vsel %vm396_vm0, %v1285_v49, 0.0 }
 0x1fc   : > { %v2645_v51 = vpop.f32.mrb[11].mxu0  ;;  %v1312_v18 = vadd.f32 %v1311_v53, %v1310_v63  ;;  %v2803_v53 = vld [vmem:[%s3902_s7 + $0x48] sm:$0xff]  }
 0x1fd   : > { %v2646_v36 = vadd.f32 %v2645_v51, %v2644_v33  ;;  %v1225_v37 = vadd.f32 %v2643_v59, %v2431_v40  ;;  %v2802_v33 = vld [vmem:[%s3902_s7] sm:$0xff]  }
 0x1ff   : > { %v1290_v46 = vadd.f32 %v1289_v1, %v1225_v37  ;;  %v1228_v42 = vadd.f32 %v2646_v36, %v2431_v40  ;;  %v3440_v1 = vpack.c.bf16 %v3436_v9, %v3436_v9 }
 0x201   : > { %v1313_v26 = vsel %vm396_vm0, %v1290_v46, 0.0  ;;  %v1293_v28 = vadd.f32 %v1292_v7, %v1228_v42  ;;  %v2647_v41 = vpop.f32.mrb[12].mxu0 }
 0x202   : > { %v1314_v14 = vadd.f32 %v1313_v26, %v1312_v18  ;;  %v2648_v47 = vpop.f32.mrb[13].mxu0 }
 0x203   : > { %v1315_v48 = vsel %vm396_vm0, %v1293_v28, 0.0  ;;  %v2649_v29 = vadd.f32 %v2648_v47, %v2647_v41  ;;  %v2650_v44 = vpop.f32.mrb[14].mxu0 }
 0x204   : > { %v1316_v60 = vadd.f32 %v1315_v48, %v1314_v14  ;;  %v2651_v57 = vpop.f32.mrb[15].mxu0  ;;  %v2806_v48 = vld [vmem:[%s3902_s7 + $0x10] sm:$0xff]  }
 0x205   : > { %v1233_v16 = vadd.f32 %v2649_v29, %v2431_v40  ;;  %v2652_v54 = vadd.f32 %v2651_v57, %v2650_v44 }
 0x207   : > { %v1298_v55 = vadd.f32 %v2721_v11, %v1233_v16  ;;  %v1236_v58 = vadd.f32 %v2652_v54, %v2431_v40  ;;  %v2493_v40 = vrot.slane %v3440_v1, 9 }
 0x209   : > { %v1317_v62 = vsel %vm396_vm0, %v1298_v55, 0.0  ;;  %v1301_v0 = vadd.f32 %v2722_v34, %v1236_v58  ;;  %v1762_v34 = vrot.slane %v3442_v5, 5 }
 0x20a   : > { %v1318_v2 = vadd.f32 %v1317_v62, %v1316_v60 }
 0x20b   : > { %v1319_v3 = vsel %vm396_vm0, %v1301_v0, 0.0  ;;  %v3448_v10 = vsel %vm3131_vm7, %v2493_v40, %v1762_v34 }
 0x20c   : > { %v1320_v4 = vadd.f32 %v1319_v3, %v1318_v2  ;;  %v2454_v3 = vld [vmem:[%s3900_s5] ss:$0 sm:$0xff] }
 0x20e   : > { %v1321_v35 = vrot.slane %v1320_v4, 4 }
 0x210   : > { %v1322_v7 = vadd.f32 %v1321_v35, %v1320_v4 }
 0x212   : > { %v1323_v11 = vrot.slane %v1322_v7, 2 }
 0x214   : > { %v1324_v8 = vadd.f32 %v1323_v11, %v1322_v7  ;;  %v2455_v11 = vld [vmem:[%s3901_s6] ss:$0 sm:$0xff] }
 0x216   : > { %v1325_v45 = vrot.slane %v1324_v8, 1 }
 0x218   : > { %v1326_v12 = vadd.f32 %v1325_v45, %v1324_v8 }
 0x21a   : > { %v1327_v13 = vmul.f32 0.015625, %v1326_v12 }
 0x21c   : > { %v1328_v50 = vsub.f32 %v1274_v17, %v1327_v13  ;;  %v1329_v15 = vsub.f32 %v1277_v22, %v1327_v13  ;;  %v1330_v19 = vsub.f32 %v1282_v25, %v1327_v13  ;;  %v1331_v43 = vsub.f32 %v1285_v49, %v1327_v13  ;;  %v2801_v49 = vld [vmem:[%s3902_s7 + $0x40] sm:$0xff]  }
 0x21d   : > { %v1332_v39 = vsub.f32 %v1290_v46, %v1327_v13  ;;  %v1333_v52 = vsub.f32 %v1293_v28, %v1327_v13  ;;  %v1334_v6 = vsub.f32 %v1298_v55, %v1327_v13  ;;  %v1335_v31 = vsub.f32 %v1301_v0, %v1327_v13  ;;  %2659 = vmatprep.subr.bf16.mxu1 %v2801_v49  ;;  %v2804_v46 = vld [vmem:[%s3902_s7 + $0x8] sm:$0xff]   ;;  %v2805_v28 = vld [vmem:[%s3902_s7 + $0x50] sm:$0xff]  }
 0x21e   : > { %v1336_v20 = vmul.f32 %v1328_v50, %v1328_v50  ;;  %v1337_v21 = vmul.f32 %v1329_v15, %v1329_v15  ;;  %v1338_v23 = vmul.f32 %v1330_v19, %v1330_v19  ;;  %v1339_v27 = vmul.f32 %v1331_v43, %v1331_v43  ;;  %2660 = vmatpush3.bf16.msra.mxu1 %v2802_v33 }
 0x21f   : > { %v1340_v63 = vmul.f32 %v1332_v39, %v1332_v39  ;;  %v1341_v22 = vmul.f32 %v1333_v52, %v1333_v52  ;;  %v1342_v18 = vmul.f32 %v1334_v6, %v1334_v6  ;;  %v1343_v42 = vmul.f32 %v1335_v31, %v1335_v31  ;;  %2661 = vmatprep.subr.bf16.mxu1 %v2803_v53 }
 0x220   : > { %v1344_v30 = vsel %vm396_vm0, %v1336_v20, 0.0  ;;  %v1345_v61 = vsel %vm396_vm0, %v1337_v21, 0.0  ;;  %v1347_v59 = vsel %vm396_vm0, %v1338_v23, 0.0  ;;  %v1349_v25 = vsel %vm396_vm0, %v1339_v27, 0.0 }
 0x221   : > { %v1346_v24 = vadd.f32 %v1345_v61, %v1344_v30  ;;  %v1351_v36 = vsel %vm396_vm0, %v1340_v63, 0.0  ;;  %v1353_v26 = vsel %vm396_vm0, %v1341_v22, 0.0  ;;  %v1355_v14 = vsel %vm396_vm0, %v1342_v18, 0.0 }
 0x222   : > { %2662 = vmatpush3.bf16.msra.mxu1 %v2804_v46  ;;  %v1357_v29 = vsel %vm396_vm0, %v1343_v42, 0.0 }
 0x223   : > { %v1348_v17 = vadd.f32 %v1347_v59, %v1346_v24  ;;  %2663 = vmatprep.subr.bf16.mxu1 %v2805_v28 }
 0x225   : > { %v1350_v51 = vadd.f32 %v1349_v25, %v1348_v17 }
 0x226   : > { %2664 = vmatpush3.bf16.msra.mxu1 %v2806_v48 }
 0x227   : > { %v1352_v37 = vadd.f32 %v1351_v36, %v1350_v51 }
 0x229   : > { %v1354_v41 = vadd.f32 %v1353_v26, %v1352_v37 }
 0x22b   : > { %v1356_v47 = vadd.f32 %v1355_v14, %v1354_v41 }
 0x22d   : > { %v1358_v44 = vadd.f32 %v1357_v29, %v1356_v47  ;;  %v3497_v47 = vld [vmem:[#allocation2] sm:$0xff] }
 0x22f   : > { %v1359_v60 = vrot.slane %v1358_v44, 4 }
 0x231   : > { %v1360_v57 = vadd.f32 %v1359_v60, %v1358_v44 }
 0x233   : > { %v1361_v16 = vrot.slane %v1360_v57, 2 }
 0x235   : > { %v1362_v54 = vadd.f32 %v1361_v16, %v1360_v57  ;;  %v3501_v16 = vpack.c.bf16 %v3497_v47, %v3497_v47 }
 0x237   : > { %v1363_v55 = vrot.slane %v1362_v54, 1 }
 0x239   : > { %v1364_v58 = vadd.f32 %v1363_v55, %v1362_v54  ;;  %v1575_v54 = vshrl.u32 %v3501_v16, 16  ;;  %v1578_v55 = vshll.u32 %v3501_v16, 16 }
 0x23b   : > { %v1365_v62 = vmul.f32 0.015625, %v1364_v58 }
 0x23d   : > { %v1366_v0 = vadd.f32 1e-05, %v1365_v62 }
 0x23f   : > { %2855 = vrsqrt.f32 %v1366_v0 }
 0x249   : > { %v2856_v2 = vpop.eup %2855 }
 0x24a   : > { %v1368_v4 = vmul.f32 %v2856_v2, %v1328_v50  ;;  %v1369_v35 = vmul.f32 %v2856_v2, %v1329_v15  ;;  %v1370_v7 = vmul.f32 %v2856_v2, %v1330_v19  ;;  %v1371_v56 = vmul.f32 %v2856_v2, %v1331_v43 }
 0x24b   : > { %v1372_v40 = vmul.f32 %v2856_v2, %v1332_v39  ;;  %v1373_v8 = vmul.f32 %v2856_v2, %v1333_v52  ;;  %v1374_v34 = vmul.f32 %v2856_v2, %v1334_v6  ;;  %v1375_v45 = vmul.f32 %v2856_v2, %v1335_v31  ;;  %v2807_v2 = vld [vmem:[%s3902_s7 + $0x58] sm:$0xff]  }
 0x24c   : > { %v1382_v12 = vmul.f32 %v2454_v3, %v1368_v4  ;;  %v1383_v13 = vmul.f32 %v2454_v3, %v1369_v35  ;;  %v1384_v20 = vmul.f32 %v2454_v3, %v1370_v7  ;;  %v1385_v21 = vmul.f32 %v2454_v3, %v1371_v56  ;;  %v1505_v7 = vld [vmem:[#allocation2 + $0x8] sm:$0x3]  ;;  %2665 = vmatprep.subr.bf16.mxu1 %v2807_v2 }
 0x24d   : > { %v1386_v23 = vmul.f32 %v2454_v3, %v1372_v40  ;;  %v1387_v27 = vmul.f32 %v2454_v3, %v1373_v8  ;;  %v1388_v30 = vmul.f32 %v2454_v3, %v1374_v34  ;;  %v1389_v61 = vmul.f32 %v2454_v3, %v1375_v45  ;;  %v2808_v3 = vld [vmem:[%s3902_s7 + $0x18] sm:$0xff]  }
 0x24e   : > { %v1396_v50 = vadd.f32 %v2455_v11, %v1382_v12  ;;  %v1397_v15 = vadd.f32 %v2455_v11, %v1383_v13  ;;  %v1398_v19 = vadd.f32 %v2455_v11, %v1384_v20  ;;  %v3482_v43 = vadd.f32 %v2455_v11, %v1385_v21  ;;  %2666 = vmatpush3.bf16.msra.mxu1 %v2808_v3  ;;  %v2809_v21 = vld [vmem:[%s3902_s7 + $0x60] sm:$0xff]  }
 0x24f   : > { %v3484_v24 = vadd.f32 %v2455_v11, %v1386_v23  ;;  %v3486_v63 = vadd.f32 %v2455_v11, %v1387_v27  ;;  %v3488_v39 = vadd.f32 %v2455_v11, %v1388_v30  ;;  %v3490_v59 = vadd.f32 %v2455_v11, %v1389_v61  ;;  %v2810_v23 = vld [vmem:[%s3902_s7 + $0x20] sm:$0xff]   ;;  %2667 = vmatprep.subr.bf16.mxu1 %v2809_v21 }
 0x250   : > { %v2456_v52 = vmul.f32 -1.442695, %v1396_v50  ;;  %v2457_v6 = vmul.f32 -1.442695, %v1397_v15  ;;  %v2458_v31 = vmul.f32 -1.442695, %v1398_v19  ;;  %v2585_v20 = vpack.c.bf16 %v1505_v7, %v1505_v7 }
 0x251   : > { %v2459_v17 = vmul.f32 -1.442695, %v3482_v43  ;;  %v2460_v22 = vmul.f32 -1.442695, %v3484_v24  ;;  %v2461_v25 = vmul.f32 -1.442695, %v3486_v63 }
 0x252   : > { %2857 = vpow2.f32 %v2456_v52  ;;  %v2462_v49 = vmul.f32 -1.442695, %v3488_v39  ;;  %v2463_v33 = vmul.f32 -1.442695, %v3490_v59  ;;  %v1577_v40 = vrot.slane %v1575_v54, 4  ;;  %2668 = vmatpush3.bf16.msra.mxu1 %v2810_v23  ;;  %v2813_v54 = vld [vmem:[%s3902_s7 + $0x70] sm:$0xff]  }
 0x253   : > { %2859 = vpow2.f32 %v2457_v6  ;;  %v1580_v8 = vrot.slane %v1578_v55, 5  ;;  %v2480_v52 = vrot.slane %v3501_v16, 9  ;;  %v2811_v6 = vld [vmem:[%s3902_s7 + $0x68] sm:$0xff]   ;;  %v2815_v23 = vld [vmem:[%s3902_s7 + $0x78] sm:$0xff]  }
 0x254   : > { %2861 = vpow2.f32 %v2458_v31  ;;  %2669 = vmatprep.subr.bf16.mxu1 %v2811_v6 }
 0x255   : > { %2863 = vpow2.f32 %v2459_v17 }
 0x256   : > { %2865 = vpow2.f32 %v2460_v22 }
 0x257   : > { %2867 = vpow2.f32 %v2461_v25 }
 0x258   : > { %2869 = vpow2.f32 %v2462_v49 }
 0x259   : > { %2871 = vpow2.f32 %v2463_v33  ;;  %v2812_v33 = vld [vmem:[%s3902_s7 + $0x28] sm:$0xff]  }
 0x25a   : > { %2670 = vmatpush3.bf16.msra.mxu1 %v2812_v33 }
 0x25b   : > { %2671 = vmatprep.subr.bf16.mxu1 %v2813_v54 }
 0x25c   : > { %v2858_v53 = vpop.eup %2857 }
 0x25d   : > { %v2860_v51 = vpop.eup %2859  ;;  %v1428_v18 = vadd.f32 1.0, %v2858_v53 }
 0x25e   : > { %v2862_v36 = vpop.eup %2861  ;;  %v1429_v37 = vadd.f32 1.0, %v2860_v51 }
 0x25f   : > { %v2864_v46 = vpop.eup %2863  ;;  %v1430_v42 = vadd.f32 1.0, %v2862_v36  ;;  %2873 = vrcp.f32 %v1428_v18 }
 0x260   : > { %v2866_v26 = vpop.eup %2865  ;;  %v1431_v28 = vadd.f32 1.0, %v2864_v46  ;;  %2875 = vrcp.f32 %v1429_v37 }
 0x261   : > { %v2868_v41 = vpop.eup %2867  ;;  %v1432_v14 = vadd.f32 1.0, %v2866_v26  ;;  %2877 = vrcp.f32 %v1430_v42 }
 0x262   : > { %v2870_v48 = vpop.eup %2869  ;;  %v1433_v29 = vadd.f32 1.0, %v2868_v41  ;;  %2879 = vrcp.f32 %v1431_v28 }
 0x263   : > { %v2872_v44 = vpop.eup %2871  ;;  %v1434_v60 = vadd.f32 1.0, %v2870_v48  ;;  %2881 = vrcp.f32 %v1432_v14 }
 0x264   : > { %v1435_v57 = vadd.f32 1.0, %v2872_v44  ;;  %2883 = vrcp.f32 %v1433_v29 }
 0x265   : > { %2885 = vrcp.f32 %v1434_v60 }
 0x266   : > { %2887 = vrcp.f32 %v1435_v57 }
 0x269   : > { %v2874_v58 = vpop.eup %2873 }
 0x26a   : > { %v2876_v62 = vpop.eup %2875  ;;  %v1452_v0 = vmul.f32 %v2874_v58, %v1396_v50 }
 0x26b   : > { %v2878_v4 = vpop.eup %2877  ;;  %v1453_v35 = vmul.f32 %v2876_v62, %v1397_v15  ;;  %v1581_v15 = vor.u32 %v1580_v8, %v1577_v40 }
 0x26c   : > { %v2880_v56 = vpop.eup %2879  ;;  %v1454_v11 = vmul.f32 %v2878_v4, %v1398_v19  ;;  %1460 = vst.msk [vmem:[#allocation2 + $0x11] sm:$0xff] %vm396_vm0, %v1452_v0  ;;  %v1584_v19 = vshll.u32 %v2585_v20, 16  ;;  %v2814_v4 = vld [vmem:[%s3902_s7 + $0x30] sm:$0xff]  }
 0x26d   : > { %v2882_v34 = vpop.eup %2881  ;;  %v1455_v45 = vmul.f32 %v2880_v56, %v3482_v43  ;;  %1461 = vst.msk [vmem:[#allocation2 + $0x21] sm:$0xff] %vm396_vm0, %v1453_v35  ;;  %v3542_v25 = vrot.slane %v1581_v15, 4  ;;  %2672 = vmatpush3.bf16.msra.mxu1 %v2814_v4 }
 0x26e   : > { %v2884_v12 = vpop.eup %2883  ;;  %v1456_v13 = vmul.f32 %v2882_v34, %v3484_v24  ;;  %1462 = vst.msk [vmem:[#allocation2 + $0x31] sm:$0xff] %vm396_vm0, %v1454_v11  ;;  %v3544_v49 = vrot.slane %v1584_v19, 5  ;;  %2673 = vmatprep.subr.bf16.mxu1 %v2815_v23 }
 0x26f   : > { %v2886_v27 = vpop.eup %2885  ;;  %v1457_v30 = vmul.f32 %v2884_v12, %v3486_v63  ;;  %1463 = vst.msk [vmem:[#allocation2 + $0x41] sm:$0xff] %vm396_vm0, %v1455_v45 }
 0x270   : > { %v2888_v61 = vpop.eup %2887  ;;  %v1458_v50 = vmul.f32 %v2886_v27, %v3488_v39  ;;  %1464 = vst.msk [vmem:[#allocation2 + $0x51] sm:$0xff] %vm396_vm0, %v1456_v13  ;;  %v1688_v39 = vrot.slane %v2585_v20, 5  ;;  %v1587_v3 = vsel %vm3113_vm6, %v3542_v25, %v3544_v49  ;;  %v2816_v27 = vld [vmem:[%s3902_s7 + $0x38] sm:$0xff]  }
 0x271   : > { %v1459_v43 = vmul.f32 %v2888_v61, %v3490_v59  ;;  %1465 = vst.msk [vmem:[#allocation2 + $0x61] sm:$0xff] %vm396_vm0, %v1457_v30  ;;  %2674 = vmatpush3.bf16.msra.mxu1 %v2816_v27 }
 0x272   : > { %1466 = vst.msk [vmem:[#allocation2 + $0x71] sm:$0xff] %vm396_vm0, %v1458_v50  ;;  %v1689_v57 = vsel %vm3131_vm7, %v2480_v52, %v1688_v39  ;;  %v1747_v52 = vshrl.u32 %v3440_v1, 16 }
 0x273   : > { %1467 = vst.msk [vmem:[#allocation2 + $0x81] sm:$0xff] %vm396_vm0, %v1459_v43  ;;  %v3530_v24 = vld [vmem:[#allocation2 + $0x10] sm:$0xff]  ;;  %v1507_v63 = vld [vmem:[#allocation2 + $0x18] sm:$0x3] }
 0x274   : > { %v1508_v31 = vld [vmem:[#allocation2 + $0x20] sm:$0xff]  ;;  %v3538_v59 = vpack.c.bf16 %v3530_v24, %v3530_v24  ;;  %v1509_v17 = vld [vmem:[#allocation2 + $0x28] sm:$0x3]  ;;  %v3540_v22 = vpack.c.bf16 %v1507_v63, %v1507_v63 }
 0x275   : > { %v1510_v53 = vld [vmem:[#allocation2 + $0x30] sm:$0xff]  ;;  %v3549_v51 = vpack.c.bf16 %v1508_v31, %v1508_v31  ;;  %v2608_v18 = vpack.c.bf16 %v1508_v31, %v3530_v24  ;;  %v3552_v36 = vpack.c.bf16 %v1509_v17, %v1509_v17  ;;  %v1511_v37 = vld [vmem:[#allocation2 + $0x38] sm:$0x3] }
 0x276   : > { %v3554_v46 = vpack.c.bf16 %v1510_v53, %v1510_v53  ;;  %v3556_v42 = vpack.c.bf16 %v1510_v53, %v1508_v31  ;;  %v1512_v26 = vld [vmem:[#allocation2 + $0x40] sm:$0xff]  ;;  %v2481_v28 = vrot.slane %v3538_v59, 9  ;;  %v1692_v41 = vrot.slane %v3540_v22, 5  ;;  %v1513_v14 = vld [vmem:[#allocation2 + $0x48] sm:$0x3] }
 0x277   : > { %1812 = vrot.lane.b32.xlu1 %v2608_v18, %s2907_s25  ;;  %v3561_v48 = vld [vmem:[#allocation2 + $0x50] sm:$0xff]  ;;  %v3563_v29 = vpack.c.bf16 %v1512_v26, %v1512_v26  ;;  %v2482_v44 = vrot.slane %v3549_v51, 9  ;;  %v1696_v60 = vrot.slane %v3552_v36, 5  ;;  %v1515_v16 = vld [vmem:[#allocation2 + $0x58] sm:$0x3]  ;;  %v2609_v58 = vpack.c.bf16 %v1512_v26, %v1510_v53 }
 0x278   : > { %1839 = vrot.lane.b32.xlu0 %v3556_v42, %s2906_s16  ;;  %v3576_v55 = vpack.c.bf16 %v3561_v48, %v3561_v48  ;;  %v3578_v62 = vpack.c.bf16 %v1511_v37, %v1511_v37  ;;  %v3580_v0 = vld [vmem:[#allocation2 + $0x60] sm:$0xff]  ;;  %v1517_v2 = vld [vmem:[#allocation2 + $0x68] sm:$0x3]  ;;  %v3590_v35 = vpack.c.bf16 %v3561_v48, %v1512_v26  ;;  %v1693_v7 = vsel %vm3131_vm7, %v2481_v28, %v1692_v41 }
 0x279   : > { %v3594_v56 = vpack.c.bf16 %v1513_v14, %v1513_v14  ;;  %v2483_v11 = vrot.slane %v3554_v46, 9  ;;  %v1697_v40 = vsel %vm3131_vm7, %v2482_v44, %v1696_v60  ;;  %v2484_v34 = vrot.slane %v3563_v29, 9  ;;  %v3644_v14 = vld [vmem:[%s3902_s7 + $0x80] sm:$0xff]   ;;  %v3673_v27 = vld [vmem:[#allocation2 + $0x70] sm:$0xff] }
 0x27a   : > { %v1700_v8 = vrot.slane %v3578_v62, 5  ;;  %v3601_v45 = vpack.c.bf16 %v1515_v16, %v1515_v16  ;;  %v3607_v13 = vpack.c.bf16 %v3580_v0, %v3580_v0  ;;  %v3609_v20 = vpack.c.bf16 %v1517_v2, %v1517_v2  ;;  %2723 = vmatprep.subr.bf16.mxu1 %v3644_v14 }
 0x27b   : > { %1814 = vrot.lane.b32.xlu1 %v2609_v58, %s2907_s25  ;;  %v1704_v12 = vrot.slane %v3594_v56, 5  ;;  %v2485_v21 = vrot.slane %v3576_v55, 9  ;;  %v1589_v50 = vshrl.u32 %v3538_v59, 16  ;;  %v1592_v15 = vshll.u32 %v3538_v59, 16 }
 0x27c   : > { %1841 = vrot.lane.b32.xlu0 %v3590_v35, %s2906_s16  ;;  %v1701_v30 = vsel %vm3131_vm7, %v2483_v11, %v1700_v8  ;;  %v1708_v61 = vrot.slane %v3601_v45, 5  ;;  %v2502_v19 = vcombine.low %v1689_v57, %v1693_v7  ;;  %v2486_v43 = vrot.slane %v3607_v13, 9  ;;  %v2818_v11 = vld [vmem:[%s3904_s9] sm:$0xff]  }
 0x27d   : > { %v1712_v63 = vrot.slane %v3609_v20, 5  ;;  %v2514_v39 = vcombine.low %v1693_v7, %v1697_v40  ;;  %v1705_v6 = vsel %vm3131_vm7, %v2484_v34, %v1704_v12  ;;  %v1591_v31 = vrot.slane %v1589_v50, 4  ;;  %2735 = vmatprep.subr.bf16.mxu0 %v2818_v11 }
 0x27e   : > { %v1594_v17 = vrot.slane %v1592_v15, 5  ;;  %v3631_v33 = vcombine.low %v1697_v40, %v1701_v30  ;;  %v1598_v59 = vshll.u32 %v3540_v22, 16  ;;  %v1603_v53 = vshrl.u32 %v3549_v51, 16  ;;  %2736 = vmatpush3.bf16.msra.mxu0 %v2818_v11 }
 0x27f   : > { %1800 = vrot.lane.b32.xlu1 %v2502_v19, %s2906_s16  ;;  %v1606_v18 = vshll.u32 %v3549_v51, 16  ;;  %v1709_v37 = vsel %vm3131_vm7, %v2485_v21, %v1708_v61  ;;  %v1612_v28 = vshll.u32 %v3552_v36, 16  ;;  %v1617_v41 = vshrl.u32 %v3554_v46, 16  ;;  %v1519_v19 = vld [vmem:[#allocation2 + $0x78] sm:$0x3] }
 0x280   : > { %1830 = vrot.lane.b32.xlu0 %v2514_v39, %s2908_s15  ;;  %v1595_v26 = vor.u32 %v1594_v17, %v1591_v31  ;;  %v3648_v22 = vsel %vm3131_vm7, %v2486_v43, %v1712_v63  ;;  %v1605_v51 = vrot.slane %v1603_v53, 4  ;;  %v1620_v60 = vshll.u32 %v3554_v46, 16  ;;  %v3687_v39 = vld [vmem:[#allocation2 + $0x80] sm:$0xff]  ;;  %v1521_v31 = vld [vmem:[#allocation2 + $0x88] sm:$0x3] }
 0x281   : > { %v1608_v44 = vrot.slane %v1606_v18, 5  ;;  %v2515_v57 = vcombine.low %v1701_v30, %v1705_v6  ;;  %v1600_v54 = vrot.slane %v1598_v59, 5  ;;  %v1619_v58 = vrot.slane %v1617_v41, 4 }
 0x282   : > { %v1596_v16 = vrot.slane %v1595_v26, 4  ;;  %v1622_v2 = vrot.slane %v1620_v60, 5  ;;  %v1626_v4 = vshll.u32 %v3578_v62, 16  ;;  %v1750_v7 = vshll.u32 %v3440_v1, 16 }
 0x283   : > { %1802 = vrot.lane.b32.xlu1 %v3631_v33, %s2906_s16  ;;  %v1609_v36 = vor.u32 %v1608_v44, %v1605_v51  ;;  %v2516_v46 = vcombine.low %v1709_v37, %v3648_v22  ;;  %v1614_v8 = vrot.slane %v1612_v28, 5  ;;  %v1631_v34 = vshrl.u32 %v3563_v29, 16 }
 0x284   : > { %1832 = vrot.lane.b32.xlu0 %v2515_v57, %s2908_s15  ;;  %v3663_v40 = vsel %vm3113_vm6, %v1596_v16, %v1600_v54  ;;  %v1623_v21 = vor.u32 %v1622_v2, %v1619_v58  ;;  %v1634_v23 = vshll.u32 %v3563_v29, 16  ;;  %v1640_v61 = vshll.u32 %v3594_v56, 16 }
 0x285   : > { %v2498_v62 = vcombine.low %v1587_v3, %v3663_v40  ;;  %v1610_v12 = vrot.slane %v1609_v36, 4  ;;  %v1633_v30 = vrot.slane %v1631_v34, 4  ;;  %v1645_v50 = vshrl.u32 %v3576_v55, 16 }
 0x286   : > { %v1648_v15 = vshll.u32 %v3576_v55, 16  ;;  %v1624_v49 = vrot.slane %v1623_v21, 4  ;;  %v1628_v3 = vrot.slane %v1626_v4, 5  ;;  %v1636_v29 = vrot.slane %v1634_v23, 5 }
 0x287   : > { %1780 = vrot.lane.b32.xlu1 %v2498_v62, %s2908_s15  ;;  %v3681_v25 = vsel %vm3113_vm6, %v1610_v12, %v1614_v8  ;;  %v1647_v43 = vrot.slane %v1645_v50, 4  ;;  %v1654_v55 = vshll.u32 %v3601_v45, 16  ;;  %v3693_v59 = vcombine.low %v1705_v6, %v1709_v37 }
 0x288   : > { %1834 = vrot.lane.b32.xlu0 %v2516_v46, %s2908_s15  ;;  %v2510_v56 = vcombine.low %v3663_v40, %v3681_v25  ;;  %v1650_v63 = vrot.slane %v1648_v15, 5  ;;  %v3691_v17 = vsel %vm3113_vm6, %v1624_v49, %v1628_v3  ;;  %v2598_v53 = vpack.c.bf16 %v3673_v27, %v3673_v27 }
 0x289   : > { %v1637_v18 = vor.u32 %v1636_v29, %v1633_v30  ;;  %v2499_v26 = vcombine.low %v3681_v25, %v3691_v17  ;;  %v1642_v28 = vrot.slane %v1640_v61, 5  ;;  %v2599_v51 = vpack.c.bf16 %v1519_v19, %v1519_v19 }
 0x28a   : > { %v1651_v41 = vor.u32 %v1650_v63, %v1647_v43  ;;  %v2600_v44 = vpack.c.bf16 %v3687_v39, %v3687_v39  ;;  %v2601_v60 = vpack.c.bf16 %v1521_v31, %v1521_v31  ;;  %v1659_v6 = vshrl.u32 %v3607_v13, 16 }
 0x28b   : > { %1804 = vrot.lane.b32.xlu1 %v3693_v59, %s2906_s16  ;;  %v1638_v45 = vrot.slane %v1637_v18, 4  ;;  %v1656_v57 = vrot.slane %v1654_v55, 5  ;;  %v1662_v16 = vshll.u32 %v3607_v13, 16  ;;  %v1668_v54 = vshll.u32 %v3609_v20, 16  ;;  %v2820_v55 = vld [vmem:[%s3904_s9 + $0x8] sm:$0xff]  }
 0x28c   : > { %1849 = vrot.lane.b32.xlu0 %v2499_v26, %s2907_s25  ;;  %v1652_v37 = vrot.slane %v1651_v41, 4  ;;  %v2490_v36 = vrot.slane %v2600_v44, 9  ;;  %v1739_v2 = vrot.slane %v2601_v60, 5  ;;  %v1661_v4 = vrot.slane %v1659_v6, 4  ;;  %2737 = vmatprep.subr.bf16.mxu0 %v2820_v55 }
 0x28d   : > { %v3709_v58 = vsel %vm3113_vm6, %v1638_v45, %v1642_v28  ;;  %v3713_v11 = vpack.c.bf16 %v3673_v27, %v3580_v0  ;;  %v1664_v8 = vrot.slane %v1662_v16, 5  ;;  %v2487_v20 = vrot.slane %v2598_v53, 9  ;;  %2738 = vmatpush3.bf16.msra.mxu0 %v2820_v55 }
 0x28e   : > { %v3717_v46 = vsel %vm3113_vm6, %v1652_v37, %v1656_v57  ;;  %v2511_v13 = vcombine.low %v3691_v17, %v3709_v58  ;;  %v1716_v34 = vrot.slane %v2599_v51, 5  ;;  %v1673_v62 = vshrl.u32 %v2598_v53, 16 }
 0x28f   : > { %1782 = vrot.lane.b32.xlu1 %v2499_v26, %s2908_s15  ;;  %v1749_v12 = vrot.slane %v1747_v52, 4  ;;  %v2610_v21 = vpack.c.bf16 %v3580_v0, %v3561_v48  ;;  %v3730_v23 = vsel %vm3131_vm7, %v2490_v36, %v1739_v2  ;;  %v1665_v30 = vor.u32 %v1664_v8, %v1661_v4 }
 0x290   : > { %1843 = vrot.lane.b32.xlu0 %v3713_v11, %s2906_s16  ;;  %v1676_v61 = vshll.u32 %v2598_v53, 16  ;;  %v2500_v50 = vcombine.low %v3709_v58, %v3717_v46  ;;  %v1670_v15 = vrot.slane %v1668_v54, 5  ;;  %v1675_v49 = vrot.slane %v1673_v62, 4 }
 0x291   : > { %v1724_v3 = vshrl.u32 %v2600_v44, 16  ;;  %v1666_v29 = vrot.slane %v1665_v30, 4  ;;  %v1682_v19 = vshll.u32 %v2599_v51, 16  ;;  %v1727_v43 = vshll.u32 %v2600_v44, 16 }
 0x292   : > { %v1678_v52 = vrot.slane %v1676_v61, 5  ;;  %v1717_v48 = vsel %vm3131_vm7, %v2487_v20, %v1716_v34  ;;  %v1752_v0 = vrot.slane %v1750_v7, 5  ;;  %v2520_v31 = vcombine.low %v3730_v23, %v3448_v10  ;;  %v2889_v20 = vld [vmem:[%s3011_s23] sm:$0xff]  ;;  %v2890_v34 = vld [vmem:[%s3011_s23 + $0x8] sm:$0xff] }
 0x293   : > { %1816 = vrot.lane.b32.xlu1 %v2610_v21, %s2907_s25  ;;  %v1726_v63 = vrot.slane %v1724_v3, 4  ;;  %v3747_v53 = vsel %vm3113_vm6, %v1666_v29, %v1670_v15  ;;  %v1729_v38 = vrot.slane %v1727_v43, 5  ;;  %v1733_v26 = vshll.u32 %v2601_v60, 16  ;;  %v2892_v21 = vld [vmem:[%s3011_s23 + $0x18] sm:$0xff]  ;;  %v2894_v61 = vld [vmem:[%s3011_s23 + $0x28] sm:$0xff] }
 0x294   : > { %1851 = vrot.lane.b32.xlu0 %v2500_v50, %s2907_s25  ;;  %v1679_v18 = vor.u32 %v1678_v52, %v1675_v49  ;;  %v2512_v1 = vcombine.low %v3717_v46, %v3747_v53  ;;  %v2517_v7 = vcombine.low %v1717_v48, %v3730_v23  ;;  %v1684_v41 = vrot.slane %v1682_v19, 5 }
 0x295   : > { %v1730_v51 = vor.u32 %v1729_v38, %v1726_v63  ;;  %v1753_v45 = vor.u32 %v1752_v0, %v1749_v12  ;;  %v1756_v44 = vshll.u32 %v3442_v5, 16  ;;  %v1735_v37 = vrot.slane %v1733_v26, 5 }
 0x296   : > { %v1680_v28 = vrot.slane %v1679_v18, 4  ;;  %v3760_v57 = vcombine.low %v3648_v22, %v1717_v48  ;;  %v2612_v22 = vpack.c.bf16 %v3436_v9, %v3687_v39  ;;  %v2611_v8 = vpack.c.bf16 %v3687_v39, %v3673_v27  ;;  %v2891_v9 = vld [vmem:[%s3011_s23 + $0x10] sm:$0xff] }
 0x297   : > { %1784 = vrot.lane.b32.xlu1 %v2500_v50, %s2908_s15  ;;  %v1731_v6 = vrot.slane %v1730_v51, 4  ;;  %v1754_v54 = vrot.slane %v1753_v45, 4  ;;  %v1758_v36 = vrot.slane %v1756_v44, 5  ;;  %v2180_v62 = vpack.c.bf16 %v2890_v34, %v2889_v20  ;;  %v2895_v39 = vld [vmem:[%s3011_s23 + $0x30] sm:$0xff]  ;;  %v2896_v50 = vld [vmem:[%s3011_s23 + $0x38] sm:$0xff] }
 0x298   : > { %1836 = vrot.lane.b32.xlu0 %v2517_v7, %s2908_s15  ;;  %v3757_v60 = vsel %vm3113_vm6, %v1680_v28, %v1684_v41  ;;  %v2181_v30 = vpack.c.bf16 %v2892_v21, %v2891_v9  ;;  %v2182_v27 = vpack.c.bf16 %v2894_v61, %v2893_v32  ;;  %v2183_v15 = vpack.c.bf16 %v2896_v50, %v2895_v39 }
 0x299   : > { %v2501_v16 = vcombine.low %v3747_v53, %v3757_v60  ;;  %v3766_v5 = vsel %vm3113_vm6, %v1731_v6, %v1735_v37  ;;  %v1759_v4 = vsel %vm3113_vm6, %v1754_v54, %v1758_v36  ;;  %2739 = vmatprep.mubr.msk.bf16.mxu0 %vm396_vm0, %v2180_v62  ;;  %v2604_v63 = vpack.c.bf16 %v3530_v24, %v3497_v47  ;;  %v2819_v47 = vld [vmem:[%s3902_s7 + $0x88] sm:$0xff]  }
 0x29a   : > { %v2513_v2 = vcombine.low %v3757_v60, %v3766_v5  ;;  %v2519_v12 = vcombine.low %v3766_v5, %v1759_v4  ;;  %2740 = vmatmul.mubr.msk.bf16.vlgmr.msra.gmra.mrb[16].mxu0 %vm396_vm0, %v2181_v30 }
 0x29b   : > { %1806 = vrot.lane.b32.xlu1 %v3760_v57, %s2906_s16  ;;  %2743 = vmatprep.mubr.msk.bf16.mxu0 %vm396_vm0, %v2182_v27 }
 0x29c   : > { %1853 = vrot.lane.b32.xlu0 %v2501_v16, %s2907_s25 }
 0x29f   : > { %1786 = vrot.lane.b32.xlu1 %v2501_v16, %s2908_s15 }
 0x2a0   : > { %1845 = vrot.lane.b32.xlu0 %v2612_v22, %s2906_s16 }
 0x2a2   : > { %2744 = vmatmul.mubr.msk.bf16.gmra.mrb[20].mxu0 %vm396_vm0, %v2183_v15 }
 0x2a3   : > { %1818 = vrot.lane.b32.xlu1 %v2611_v8, %s2907_s25 }
 0x2a4   : > { %1855 = vrot.lane.b32.xlu0 %v2519_v12, %s2907_s25 }
 0x2e9   : > { %v1813_v49 = vpop.permute.xlu1 %1812 }
 0x2ea   : > { %v1840_v3 = vpop.permute.xlu0 %1839 }
 0x2ed   : > { %v1815_v29 = vpop.permute.xlu1 %1814 }
 0x2ee   : > { %v1842_v52 = vpop.permute.xlu0 %1841 }
 0x2f1   : > { %v1801_v19 = vpop.permute.xlu1 %1800 }
 0x2f2   : > { %v1831_v43 = vpop.permute.xlu0 %1830 }
 0x2f3   : > { %v1893_v26 = vsel %vm396_vm0, %v2510_v56, %v1831_v43 }
 0x2f4   : > { %v1904_v51 = vsel %vm993_vm8, %v1893_v26, %v1840_v3 }
 0x2f5   : > { %v1803_v48 = vpop.permute.xlu1 %1802 }
 0x2f6   : > { %v1833_v0 = vpop.permute.xlu0 %1832 }
 0x2f7   : > { %v1896_v56 = vsel %vm396_vm0, %v2511_v13, %v1833_v0 }
 0x2f8   : > { %v1906_v54 = vsel %vm993_vm8, %v1896_v56, %v1842_v52 }
 0x2f9   : > { %v1781_v55 = vpop.permute.xlu1 %1780 }
 0x2fa   : > { %v1835_v18 = vpop.permute.xlu0 %1834  ;;  %v1861_v38 = vsel %vm396_vm0, %v2604_v63, %v1781_v55 }
 0x2fb   : > { %v1872_v7 = vsel %vm993_vm8, %v1861_v38, %v1801_v19  ;;  %v1899_v58 = vsel %vm396_vm0, %v2512_v1, %v1835_v18 }
 0x2fc   : > { %v1880_v24 = vsel %vm1002_vm9, %v1872_v7, %v1813_v49 }
 0x2fd   : > { %v1805_v28 = vpop.permute.xlu1 %1804 }
 0x2fe   : > { %v1850_v41 = vpop.permute.xlu0 %1849 }
 0x2ff   : > { %v1912_v45 = vsel %vm1002_vm9, %v1904_v51, %v1850_v41 }
 0x300   : > { %2082 = vmatprep.mubr.bf16.mxu1 %v1912_v45 }
 0x301   : > { %2083 = vmatmul.mubr.bf16.vlgmr.msra.gmra.mrb[8].mxu1 %v1880_v24  ;;  %v1783_v44 = vpop.permute.xlu1 %1782 }
 0x302   : > { %2724 = vmatpush3.bf16.msra.mxu1 %v3644_v14  ;;  %v1844_v40 = vpop.permute.xlu0 %1843  ;;  %v1864_v25 = vsel %vm396_vm0, %v3556_v42, %v1783_v44 }
 0x303   : > { %2725 = vmatprep.subr.bf16.mxu1 %v2819_v47  ;;  %v1874_v37 = vsel %vm993_vm8, %v1864_v25, %v1803_v48  ;;  %v1908_v8 = vsel %vm993_vm8, %v1899_v58, %v1844_v40 }
 0x304   : > { %v1883_v14 = vsel %vm1002_vm9, %v1874_v37, %v1815_v29 }
 0x305   : > { %v1817_v6 = vpop.permute.xlu1 %1816 }
 0x306   : > { %v1852_v16 = vpop.permute.xlu0 %1851  ;;  %2726 = vmatpush3.bf16.msra.mxu1 %v2819_v47  ;;  %v2521_v47 = vld [vmem:[%s3903_s8] ss:$0 sm:$0xff] }
 0x307   : > { %v1915_v36 = vsel %vm1002_vm9, %v1906_v54, %v1852_v16  ;;  %v2544_v16 = vld [vmem:[%s3905_s10] ss:$0 sm:$0xff] }
 0x308   : > { %2090 = vmatprep.mubr.bf16.mxu1 %v1915_v36 }
 0x309   : > { %2091 = vmatmul.mubr.bf16.gmra.mrb[12].mxu1 %v1883_v14  ;;  %v1785_v42 = vpop.permute.xlu1 %1784 }
 0x30a   : > { %v1837_v22 = vpop.permute.xlu0 %1836  ;;  %v1867_v17 = vsel %vm396_vm0, %v3590_v35, %v1785_v42 }
 0x30b   : > { %v1876_v4 = vsel %vm993_vm8, %v1867_v17, %v1805_v28  ;;  %v1902_v46 = vsel %vm396_vm0, %v2513_v2, %v1837_v22 }
 0x30c   : > { %v1886_v62 = vsel %vm1002_vm9, %v1876_v4, %v1817_v6 }
 0x30d   : > { %v1807_v13 = vpop.permute.xlu1 %1806 }
 0x30e   : > { %v1854_v20 = vpop.permute.xlu0 %1853 }
 0x30f   : > { %v1918_v34 = vsel %vm1002_vm9, %v1908_v8, %v1854_v20 }
 0x310   : > { %2098 = vmatprep.mubr.bf16.mxu1 %v1918_v34 }
 0x311   : > { %2099 = vmatmul.mubr.bf16.gmra.mrb[16].mxu1 %v1886_v62  ;;  %v1787_v12 = vpop.permute.xlu1 %1786 }
 0x312   : > { %v1846_v9 = vpop.permute.xlu0 %1845  ;;  %v1870_v35 = vsel %vm396_vm0, %v3713_v11, %v1787_v12 }
 0x313   : > { %v1878_v1 = vsel %vm993_vm8, %v1870_v35, %v1807_v13  ;;  %v1910_v21 = vsel %vm993_vm8, %v1902_v46, %v1846_v9 }
 0x315   : > { %v1819_v53 = vpop.permute.xlu1 %1818 }
 0x316   : > { %v1856_v30 = vpop.permute.xlu0 %1855  ;;  %v1889_v32 = vsel %vm1002_vm9, %v1878_v1, %v1819_v53 }
 0x317   : > { %v1921_v61 = vsel %vm1002_vm9, %v1910_v21, %v1856_v30 }
 0x318   : > { %2106 = vmatprep.mubr.bf16.mxu1 %v1921_v61 }
 0x319   : > { %2107 = vmatmul.mubr.bf16.gmra.mrb[20].mxu1 %v1889_v32 }
 0x31a   : > { %2727 = vmatprep.mubr.msk.bf16.mxu1 %vm396_vm0, %v3631_v33 }
 0x321   : > { %2728 = vmatmul.mubr.msk.bf16.vlgmr.msra.gmra.mrb[24].mxu1 %vm396_vm0, %v3693_v59 }
 0x322   : > { %2731 = vmatprep.mubr.msk.bf16.mxu1 %vm396_vm0, %v3760_v57 }
 0x329   : > { %2732 = vmatmul.mubr.msk.bf16.gmra.mrb[28].mxu1 %vm396_vm0, %v2520_v31 }
 0x36d   : > { %v2741_v11 = vpop.f32.mrb[16].mxu0 }
 0x36e   : > { %v2253_v60 = vpop.f32.mrb[17].mxu0 }
 0x36f   : > { %v2742_v5 = vpop.f32.mrb[18].mxu0 }
 0x370   : > { %v2256_v2 = vpop.f32.mrb[19].mxu0 }
 0x375   : > { %v3851_v27 = vpop.f32.mrb[20].mxu0 }
 0x376   : > { %v3853_v39 = vpop.f32.mrb[21].mxu0 }
 0x377   : > { %v3855_v33 = vpop.f32.mrb[22].mxu0 }
 0x378   : > { %v3857_v50 = vpop.f32.mrb[23].mxu0 }
 0x3d4   : > { %v2675_v59 = vpop.f32.mrb[8].mxu1 }
 0x3d5   : > { %v2676_v15 = vpop.f32.mrb[9].mxu1 }
 0x3d6   : > { %v2677_v57 = vadd.f32 %v2676_v15, %v2675_v59  ;;  %v2678_v49 = vpop.f32.mrb[10].mxu1 }
 0x3d7   : > { %v2679_v3 = vpop.f32.mrb[11].mxu1 }
 0x3d8   : > { %v2680_v10 = vadd.f32 %v2679_v3, %v2678_v49  ;;  %v2085_v40 = vadd.f32 %v2677_v57, %v2521_v47 }
 0x3da   : > { %v2088_v36 = vadd.f32 %v2680_v10, %v2521_v47 }
 0x3dc   : > { %v2681_v23 = vpop.f32.mrb[12].mxu1 }
 0x3dd   : > { %v2682_v31 = vpop.f32.mrb[13].mxu1 }
 0x3de   : > { %v2683_v29 = vadd.f32 %v2682_v31, %v2681_v23  ;;  %v2684_v52 = vpop.f32.mrb[14].mxu1 }
 0x3df   : > { %v2685_v19 = vpop.f32.mrb[15].mxu1 }
 0x3e0   : > { %v2686_v43 = vadd.f32 %v2685_v19, %v2684_v52  ;;  %v2093_v24 = vadd.f32 %v2683_v29, %v2521_v47 }
 0x3e2   : > { %v2096_v6 = vadd.f32 %v2686_v43, %v2521_v47 }
 0x3e4   : > { %v2687_v48 = vpop.f32.mrb[16].mxu1 }
 0x3e5   : > { %v2688_v0 = vpop.f32.mrb[17].mxu1 }
 0x3e6   : > { %v2689_v63 = vadd.f32 %v2688_v0, %v2687_v48  ;;  %v2690_v55 = vpop.f32.mrb[18].mxu1 }
 0x3e7   : > { %v2691_v18 = vpop.f32.mrb[19].mxu1 }
 0x3e8   : > { %v2692_v38 = vadd.f32 %v2691_v18, %v2690_v55  ;;  %v2101_v35 = vadd.f32 %v2689_v63, %v2521_v47 }
 0x3ea   : > { %v2104_v32 = vadd.f32 %v2692_v38, %v2521_v47 }
 0x3ec   : > { %v2693_v26 = vpop.f32.mrb[20].mxu1 }
 0x3ed   : > { %v2694_v7 = vpop.f32.mrb[21].mxu1 }
 0x3ee   : > { %v2695_v28 = vadd.f32 %v2694_v7, %v2693_v26  ;;  %v2696_v41 = vpop.f32.mrb[22].mxu1 }
 0x3ef   : > { %v2697_v51 = vpop.f32.mrb[23].mxu1 }
 0x3f0   : > { %v2698_v45 = vadd.f32 %v2697_v51, %v2696_v41  ;;  %v2109_v62 = vadd.f32 %v2695_v28, %v2521_v47 }
 0x3f2   : > { %v2112_v1 = vadd.f32 %v2698_v45, %v2521_v47 }
 0x3f4   : > { %v2729_v44 = vpop.f32.mrb[24].mxu1 }
 0x3f5   : > { %v2158_v25 = vadd.f32 %v2729_v44, %v2093_v24  ;;  %v2149_v56 = vpop.f32.mrb[25].mxu1 }
 0x3f6   : > { %v2150_v37 = vadd.f32 %v2149_v56, %v2085_v40  ;;  %v2730_v54 = vpop.f32.mrb[26].mxu1 }
 0x3f7   : > { %v2748_v14 = vadd.f32 %v2741_v11, %v2158_v25  ;;  %v2161_v42 = vadd.f32 %v2730_v54, %v2096_v6  ;;  %v2152_v22 = vpop.f32.mrb[27].mxu1 }
 0x3f8   : > { %v2751_v17 = vadd.f32 %v2253_v60, %v2150_v37  ;;  %v2153_v58 = vadd.f32 %v2152_v22, %v2088_v36 }
 0x3f9   : > { %v2749_v13 = vadd.f32 %v2748_v14, %v2544_v16  ;;  %v2754_v4 = vadd.f32 %v2544_v16, %v2161_v42 }
 0x3fa   : > { %v2752_v8 = vadd.f32 %v2751_v17, %v2544_v16  ;;  %v2757_v20 = vadd.f32 %v2544_v16, %v2153_v58 }
 0x3fb   : > { %2294 = vst.msk [vmem:[%s3870_s22 + $0x10] sm:$0xff] %vm396_vm0, %v2749_v13  ;;  %v2755_v34 = vadd.f32 %v2754_v4, %v2742_v5 }
 0x3fc   : > { %2292 = vst.msk [vmem:[%s3870_s22] sm:$0xff] %vm396_vm0, %v2752_v8  ;;  %v2758_v12 = vadd.f32 %v2757_v20, %v2256_v2  ;;  %v2733_v9 = vpop.f32.mrb[28].mxu1 }
 0x3fd   : > { %2295 = vst.msk [vmem:[%s3870_s22 + $0x18] sm:$0xff] %vm396_vm0, %v2755_v34  ;;  %v2174_v46 = vadd.f32 %v2733_v9, %v2109_v62  ;;  %v2165_v53 = vpop.f32.mrb[29].mxu1 }
 0x3fe   : > { %2293 = vst.msk [vmem:[%s3870_s22 + $0x8] sm:$0xff] %vm396_vm0, %v2758_v12  ;;  %v2166_v21 = vadd.f32 %v2165_v53, %v2101_v35  ;;  %v2734_v30 = vpop.f32.mrb[30].mxu1 }
 0x3ff   : > { %v2760_v61 = vadd.f32 %v2544_v16, %v2174_v46  ;;  %v2177_v11 = vadd.f32 %v2734_v30, %v2112_v1  ;;  %v2168_v60 = vpop.f32.mrb[31].mxu1 }
 0x400   : > { %v2763_v5 = vadd.f32 %v2544_v16, %v2166_v21  ;;  %v2169_v2 = vadd.f32 %v2168_v60, %v2104_v32 }
 0x401   : > { %v2761_v59 = vadd.f32 %v2760_v61, %v3851_v27  ;;  %v2766_v15 = vadd.f32 %v2544_v16, %v2177_v11 }
 0x402   : > { %v2764_v57 = vadd.f32 %v2763_v5, %v3853_v39  ;;  %v2769_v49 = vadd.f32 %v2544_v16, %v2169_v2 }
 0x403   : > { %2298 = vst.msk [vmem:[%s3870_s22 + $0x30] sm:$0xff] %vm396_vm0, %v2761_v59  ;;  %v2767_v3 = vadd.f32 %v2766_v15, %v3855_v33 }
 0x404   : > { %2296 = vst.msk [vmem:[%s3870_s22 + $0x20] sm:$0xff] %vm396_vm0, %v2764_v57  ;;  %v2770_v10 = vadd.f32 %v2769_v49, %v3857_v50 }
 0x405   : > { %2299 = vst.msk [vmem:[%s3870_s22 + $0x38] sm:$0xff] %vm396_vm0, %v2767_v3 }
 0x406   : > { %2297 = vst.msk [vmem:[%s3870_s22 + $0x28] sm:$0xff] %vm396_vm0, %v2770_v10 }
 0x407 PF: > { %s21_s17 = sadd.s32 1, %s2903_s17  }
 0x408   : > { %p18_p4 = scmp.ge.s32.totalorder %s21_s17, 4  }
 0x40a   :  { %20 = sbr.rel (!%p18_p4) target bundleno = 1 (0x1), region = 95 }

</bundles_post_ra>
